<compile_context>
chip_gen: v5e
topology: v5e:2x2
jax: 0.10.0
libtpu: 0.0.40
codegen_flags: <defaults>
</compile_context>

<pallas_src>
import numpy as np
import jax
import jax.numpy as jnp
from jax import lax
from jax.experimental import pallas as pl
from jax.experimental.pallas import tpu as pltpu


# ----------------------------------------------------------------------------
# SignalUtils equivalents (deterministic, in-script; mel-spaced band edges)
# ----------------------------------------------------------------------------
def get_mel_freqs(N_filt, fs):
    low_freq_mel = 80.0
    high_freq_mel = 2595.0 * np.log10(1.0 + (fs / 2.0) / 700.0)
    mel_points = np.linspace(low_freq_mel, high_freq_mel, N_filt)
    return 700.0 * (10.0 ** (mel_points / 2595.0) - 1.0)


def get_f1_f2(mel_freqs, fs):
    b1 = np.roll(mel_freqs, 1)
    b2 = np.roll(mel_freqs, -1)
    b1[0] = 30.0
    b2[-1] = fs / 2.0 - 100.0
    return b1, b2


def kernel_gamma(amp, f1, f2, order, t):
    # TODO(synk): exact SignalUtils.kernel_gamma source is unavailable; this is
    # the standard gammatone impulse response with center (f1+f2)/2, bw (f2-f1).
    fc = (f1 + f2) / 2.0
    bw = f2 - f1
    return (amp * t ** (order - 1)
            * jnp.exp(-2.0 * jnp.pi * bw * t)
            * jnp.cos(2.0 * jnp.pi * fc * t))


def build_filters(norm_f1, norm_f2, amp_list, N_filt, Filt_dim, fs):
    """Vectorized equivalent of the per-filter loop in forward()."""
    freq_scale = float(fs)
    min_freq = 50.0
    N = Filt_dim
    t = jnp.linspace(1.0, float(N), N) / fs                       # torch.linspace(1, N, N)/fs
    f1_freq = jnp.abs(norm_f1) + min_freq / freq_scale
    f2_freq = f1_freq + jnp.abs(norm_f2 - f1_freq) + min_freq / freq_scale
    amplitude = jnp.abs(amp_list)
    n = jnp.linspace(0.0, float(N), N)
    window = 0.54 - 0.46 * jnp.cos(2.0 * jnp.pi * n / N)          # Hamming-ish
    f1 = f1_freq * freq_scale
    f2 = f2_freq * freq_scale
    ir = kernel_gamma(amplitude[:, None], f1[:, None], f2[:, None], 4, t[None, :])
    # Signed max on purpose: matches `impulse_response / torch.max(impulse_response)`.
    ir = ir / jnp.max(ir, axis=1, keepdims=True)
    filters = ir * window[None, :]
    return filters.astype(jnp.float32)                            # (N_filt, Filt_dim)


# ----------------------------------------------------------------------------
# Pallas kernel: one lane-dense output-length tile per grid step, all batches
# folded into the block, single batched MXU contraction over the filter taps.
# ----------------------------------------------------------------------------
def _conv1d_mxu_kernel(x_ref, halo_ref, w_ref, o_ref):
    # x_ref   : (B, T)        current input chunk (bf16)
    # halo_ref: (B, HALO)     next HALO samples (K-1 rounded up to lanes, bf16)
    # w_ref   : (N_filt, K)   filter bank (bf16), resident across the grid
    # o_ref   : (B, N_filt, T) lane-dense (T % 128 == 0) output tile (f32)
    B, N_filt, T = o_ref.shape
    K = w_ref.shape[1]
    # Attach the halo once; everything below is per-tile VMEM-resident work.
    xx = jnp.concatenate([x_ref[...], halo_ref[...]], axis=1)         # (B, T + HALO)
    # Batched im2col slab, built ONCE (K static lane shifts, outside any accumulate):
    #   slab[b, k, t] = x[b, tile_off + t + k]
    slab = jnp.stack([xx[:, k:k + T] for k in range(K)], axis=1)      # (B, K, T)
    w_b = jnp.broadcast_to(w_ref[...], (B, N_filt, K))                # tiny, hoisted
    # Single batched MXU contraction over K with f32 accumulation; the result is
    # already in (B, N_filt, T) layout, so no in-kernel relayout before the store.
    y = jnp.einsum('bnk,bkt->bnt', w_b, slab,
                   preferred_element_type=jnp.float32)
    o_ref[...] = y.astype(o_ref.dtype)           # one full, unmasked, lane-dense store


def _round_up(n, m):
    return ((n + m - 1) // m) * m


def _pick_tile_len(B, N_filt, K, halo, in_bytes, out_bytes, target=4096):
    """Largest lane-aligned output-tile length whose double-buffered working set
    stays comfortably inside VMEM on every generation (v7x has only 64 MiB)."""
    try:
        vmem_cap = int(getattr(pltpu.get_tpu_info(), "vmem_capacity_bytes"))
    except Exception:
        vmem_cap = 64 * 1024 * 1024                        # v7x floor
    budget = min(vmem_cap // 4, 20 * 1024 * 1024)          # stays under the 32 MiB scoped limit
    per_t = (2 * B * in_bytes                              # x block (double-buffered)
             + 2 * B * N_filt * out_bytes                  # output block (double-buffered)
             + B * K * in_bytes                            # im2col slab (in-kernel temp)
             + 2 * B * N_filt * 4)                         # f32 dot result + store temp
    fixed = 2 * B * halo * in_bytes + 2 * N_filt * K * in_bytes
    t_max = max(halo, ((budget - fixed) // per_t) // halo * halo)
    return int(max(halo, min(_round_up(target, halo), t_max)))


def kernel_gamma_conv(x, filters, *, tile_out=None,
                      in_dtype=jnp.bfloat16, out_dtype=jnp.float32):
    """VALID conv1d (stride 1, cross-correlation like torch F.conv1d) of
    (B, 1, L) with (N_filt, K) -> (B, N_filt, L - K + 1)."""
    B, C, L = x.shape
    assert C == 1, "KernelGammaConv applies filters.view(N_filt, 1, K): in_channels must be 1"
    N_filt, K = filters.shape
    L_out = L - K + 1
    assert L_out >= 1

    in_bytes = jnp.dtype(in_dtype).itemsize
    out_bytes = jnp.dtype(out_dtype).itemsize
    halo = _round_up(max(K - 1, 1), 128)        # lane-rounded halo; fetched as its own small block

    auto = tile_out is None
    if auto:
        tile_out = _pick_tile_len(B, N_filt, K, halo, in_bytes, out_bytes)
    # T is a multiple of `halo` (hence of 128): lane-dense output tiles and an
    # integral block index (t + 1) * T / halo for the halo window.
    T = max(halo, _round_up(min(int(tile_out), max(L_out, 1)), halo))
    if auto:
        # v7x has 2 TensorCores and shards the "parallel" grid axis across them;
        # keep at least 2 tiles whenever the signal is long enough.
        T = min(T, max(halo, _round_up((L_out + 1) // 2, halo)))

    num_tiles = -(-L_out // T)
    L_out_pad = num_tiles * T
    L_x_pad = num_tiles * T + halo              # the halo block of the last tile must exist
    # bf16 inputs: MXU-native on v5e/v6e/v7x, halves input HBM/VMEM traffic;
    # the contraction still accumulates in f32 (preferred_element_type).
    x2 = jnp.pad(x[:, 0, :], ((0, 0), (0, L_x_pad - L))).astype(in_dtype)
    w = filters.astype(in_dtype)

    blocks_per_halo = T // halo
    out_pad = pl.pallas_call(
        _conv1d_mxu_kernel,
        out_shape=jax.ShapeDtypeStruct((B, N_filt, L_out_pad), out_dtype),
        grid=(num_tiles,),
        in_specs=[
            # current length chunk: each input element is DMA'd ~once
            pl.BlockSpec((B, T), lambda t: (0, t)),
            # small halo window right after this chunk: element offset (t+1)*T
            # == block index (t+1)*(T//halo) in halo-sized blocks
            pl.BlockSpec((B, halo), lambda t: (0, (t + 1) * blocks_per_halo)),
            # full filter bank, resident across the whole grid
            pl.BlockSpec((N_filt, K), lambda t: (0, 0)),
        ],
        out_specs=pl.BlockSpec((B, N_filt, T), lambda t: (0, 0, t)),
        compiler_params=pltpu.CompilerParams(
            dimension_semantics=("parallel",),        # output tiles are independent
            vmem_limit_bytes=32 * 1024 * 1024,        # safe on v5e/v6e/v7x; tile picker budgets below this
        ),
    )(x2, x2, w)
    # TODO(synk): emit a bf16 output (out_dtype=jnp.bfloat16) if the consumer
    # tolerates it — halves writeback traffic (biggest win on v5e); kept f32 here
    # to match F.conv1d's output dtype exactly.
    return out_pad[:, :, :L_out]


# ----------------------------------------------------------------------------
if __name__ == "__main__":
    N_filt, Filt_dim, fs = 8, 16, 16000
    B, L = 2, 1000      # L_out = 985 -> two 512-wide output tiles, exercises halo + tail padding

    # Deterministic parameter init (matches module __init__ shapes)
    mel = get_mel_freqs(N_filt, fs)
    f1_np, f2_np = get_f1_f2(mel, fs)
    norm_f1 = jnp.asarray(f1_np / fs, dtype=jnp.float32)          # nn.Parameter f1/fs
    norm_f2 = jnp.asarray(f2_np / fs, dtype=jnp.float32)          # nn.Parameter f2/fs
    amp_list = jnp.ones((N_filt,), dtype=jnp.float32)             # nn.Parameter ones

    key = jax.random.PRNGKey(0)
    x = jax.random.normal(key, (B, 1, L), dtype=jnp.float32)

    filters = build_filters(norm_f1, norm_f2, amp_list, N_filt, Filt_dim, fs)
    out = kernel_gamma_conv(x, filters)
    out = jax.block_until_ready(out)

    # Quiet correctness cross-check against XLA's conv with the same bf16-quantized
    # inputs and f32 accumulation (torch F.conv1d semantics: VALID, stride 1,
    # cross-correlation), so the only difference is accumulation order.
    x_q = x.astype(jnp.bfloat16).astype(jnp.float32)
    w_q = filters.astype(jnp.bfloat16).astype(jnp.float32)
    ref = lax.conv_general_dilated(
        x_q, w_q[:, None, :], window_strides=(1,), padding="VALID",
        dimension_numbers=("NCH", "OIH", "NCH"),
        precision=lax.Precision.HIGHEST)
    assert out.shape == (B, N_filt, L - Filt_dim + 1)
    assert jnp.allclose(out, ref, atol=1e-2, rtol=1e-2), float(jnp.max(jnp.abs(out - ref)))

    print("KERNEL_OK")
</pallas_src>

<mosaic_0001>
module attributes {stable_mosaic.version = 11 : i64} {
  func.func @_conv1d_mxu_kernel(%arg0: i32, %arg1: memref<2x512xbf16, #tpu.memory_space<vmem>>, %arg2: memref<2x128xbf16, #tpu.memory_space<vmem>>, %arg3: memref<8x16xbf16, #tpu.memory_space<vmem>>, %arg4: memref<2x8x512xf32, #tpu.memory_space<vmem>>) attributes {dimension_semantics = [#tpu.dimension_semantics<parallel>], iteration_bounds = array<i64: 2>, scalar_prefetch = 0 : i64, scratch_operands = 0 : i64, tpu.core_type = #tpu.core_type<tc>, window_params = [{transform_indices = @transform_0, window_bounds = array<i64: 2, 512>}, {transform_indices = @transform_1, window_bounds = array<i64: 2, 128>}, {pipeline_mode = #tpu.pipeline_mode<synchronous>, transform_indices = @transform_2, window_bounds = array<i64: 8, 16>}, {transform_indices = @transform_3, window_bounds = array<i64: 2, 8, 512>}]} {
    %c0 = arith.constant 0 : index
    %c0_0 = arith.constant 0 : index
    %0 = vector.load %arg1[%c0, %c0_0] : memref<2x512xbf16, #tpu.memory_space<vmem>>, vector<2x512xbf16>
    %c0_1 = arith.constant 0 : index
    %c0_2 = arith.constant 0 : index
    %1 = vector.load %arg2[%c0_1, %c0_2] : memref<2x128xbf16, #tpu.memory_space<vmem>>, vector<2x128xbf16>
    %2 = tpu.concatenate %0, %1 in 1 : vector<2x512xbf16>, vector<2x128xbf16> -> vector<2x640xbf16>
    %3 = vector.extract_strided_slice %2 {offsets = [0, 0], sizes = [2, 512], strides = [1, 1]} : vector<2x640xbf16> to vector<2x512xbf16>
    %4 = vector.extract_strided_slice %2 {offsets = [0, 1], sizes = [2, 512], strides = [1, 1]} : vector<2x640xbf16> to vector<2x512xbf16>
    %5 = vector.extract_strided_slice %2 {offsets = [0, 2], sizes = [2, 512], strides = [1, 1]} : vector<2x640xbf16> to vector<2x512xbf16>
    %6 = vector.extract_strided_slice %2 {offsets = [0, 3], sizes = [2, 512], strides = [1, 1]} : vector<2x640xbf16> to vector<2x512xbf16>
    %7 = vector.extract_strided_slice %2 {offsets = [0, 4], sizes = [2, 512], strides = [1, 1]} : vector<2x640xbf16> to vector<2x512xbf16>
    %8 = vector.extract_strided_slice %2 {offsets = [0, 5], sizes = [2, 512], strides = [1, 1]} : vector<2x640xbf16> to vector<2x512xbf16>
    %9 = vector.extract_strided_slice %2 {offsets = [0, 6], sizes = [2, 512], strides = [1, 1]} : vector<2x640xbf16> to vector<2x512xbf16>
    %10 = vector.extract_strided_slice %2 {offsets = [0, 7], sizes = [2, 512], strides = [1, 1]} : vector<2x640xbf16> to vector<2x512xbf16>
    %11 = vector.extract_strided_slice %2 {offsets = [0, 8], sizes = [2, 512], strides = [1, 1]} : vector<2x640xbf16> to vector<2x512xbf16>
    %12 = vector.extract_strided_slice %2 {offsets = [0, 9], sizes = [2, 512], strides = [1, 1]} : vector<2x640xbf16> to vector<2x512xbf16>
    %13 = vector.extract_strided_slice %2 {offsets = [0, 10], sizes = [2, 512], strides = [1, 1]} : vector<2x640xbf16> to vector<2x512xbf16>
    %14 = vector.extract_strided_slice %2 {offsets = [0, 11], sizes = [2, 512], strides = [1, 1]} : vector<2x640xbf16> to vector<2x512xbf16>
    %15 = vector.extract_strided_slice %2 {offsets = [0, 12], sizes = [2, 512], strides = [1, 1]} : vector<2x640xbf16> to vector<2x512xbf16>
    %16 = vector.extract_strided_slice %2 {offsets = [0, 13], sizes = [2, 512], strides = [1, 1]} : vector<2x640xbf16> to vector<2x512xbf16>
    %17 = vector.extract_strided_slice %2 {offsets = [0, 14], sizes = [2, 512], strides = [1, 1]} : vector<2x640xbf16> to vector<2x512xbf16>
    %18 = vector.extract_strided_slice %2 {offsets = [0, 15], sizes = [2, 512], strides = [1, 1]} : vector<2x640xbf16> to vector<2x512xbf16>
    %19 = vector.shape_cast %3 : vector<2x512xbf16> to vector<2x1x512xbf16>
    %20 = vector.shape_cast %4 : vector<2x512xbf16> to vector<2x1x512xbf16>
    %21 = vector.shape_cast %5 : vector<2x512xbf16> to vector<2x1x512xbf16>
    %22 = vector.shape_cast %6 : vector<2x512xbf16> to vector<2x1x512xbf16>
    %23 = vector.shape_cast %7 : vector<2x512xbf16> to vector<2x1x512xbf16>
    %24 = vector.shape_cast %8 : vector<2x512xbf16> to vector<2x1x512xbf16>
    %25 = vector.shape_cast %9 : vector<2x512xbf16> to vector<2x1x512xbf16>
    %26 = vector.shape_cast %10 : vector<2x512xbf16> to vector<2x1x512xbf16>
    %27 = vector.shape_cast %11 : vector<2x512xbf16> to vector<2x1x512xbf16>
    %28 = vector.shape_cast %12 : vector<2x512xbf16> to vector<2x1x512xbf16>
    %29 = vector.shape_cast %13 : vector<2x512xbf16> to vector<2x1x512xbf16>
    %30 = vector.shape_cast %14 : vector<2x512xbf16> to vector<2x1x512xbf16>
    %31 = vector.shape_cast %15 : vector<2x512xbf16> to vector<2x1x512xbf16>
    %32 = vector.shape_cast %16 : vector<2x512xbf16> to vector<2x1x512xbf16>
    %33 = vector.shape_cast %17 : vector<2x512xbf16> to vector<2x1x512xbf16>
    %34 = vector.shape_cast %18 : vector<2x512xbf16> to vector<2x1x512xbf16>
    %35 = tpu.concatenate %19, %20, %21, %22, %23, %24, %25, %26, %27, %28, %29, %30, %31, %32, %33, %34 in 1 : vector<2x1x512xbf16>, vector<2x1x512xbf16>, vector<2x1x512xbf16>, vector<2x1x512xbf16>, vector<2x1x512xbf16>, vector<2x1x512xbf16>, vector<2x1x512xbf16>, vector<2x1x512xbf16>, vector<2x1x512xbf16>, vector<2x1x512xbf16>, vector<2x1x512xbf16>, vector<2x1x512xbf16>, vector<2x1x512xbf16>, vector<2x1x512xbf16>, vector<2x1x512xbf16>, vector<2x1x512xbf16> -> vector<2x16x512xbf16>
    %c0_3 = arith.constant 0 : index
    %c0_4 = arith.constant 0 : index
    %36 = vector.load %arg3[%c0_3, %c0_4] : memref<8x16xbf16, #tpu.memory_space<vmem>>, vector<8x16xbf16>
    %37 = vector.shape_cast %36 : vector<8x16xbf16> to vector<1x8x16xbf16>
    %38 = vector.broadcast %37 : vector<1x8x16xbf16> to vector<2x8x16xbf16>
    "tpu.trace_start"() <{level = 10 : i32, message = "bnk,bkt->bnt"}> : () -> ()
    %cst = arith.constant dense<0.000000e+00> : vector<2x8x512xf32>
    %39 = tpu.matmul %38, %35, %cst {dimension_numbers = #tpu.dot_dimension_numbers<[2], [1], [1], [2], [0, 0, 0, 1, 1, 2], [0], [0]>} : vector<2x8x16xbf16>, vector<2x16x512xbf16>, vector<2x8x512xf32> -> vector<2x8x512xf32>
    "tpu.trace_stop"() : () -> ()
    %c0_5 = arith.constant 0 : index
    %c0_6 = arith.constant 0 : index
    %c0_7 = arith.constant 0 : index
    %40 = vector.load %arg4[%c0_5, %c0_6, %c0_7] : memref<2x8x512xf32, #tpu.memory_space<vmem>>, vector<2x8x512xf32>
    tpu.vector_store %arg4[%c0_5, %c0_6, %c0_7], %39 {strides = array<i32>} : memref<2x8x512xf32, #tpu.memory_space<vmem>>, vector<2x8x512xf32>,
    return
  }
  func.func @transform_0(%arg0: i32) -> (i32, i32) {
    %c0_i32 = arith.constant 0 : i32
    %c0_i32_0 = arith.constant 0 : i32
    return %c0_i32, %arg0 : i32, i32
  }
  func.func @transform_1(%arg0: i32) -> (i32, i32) {
    %c1_i32 = arith.constant 1 : i32
    %0 = arith.addi %arg0, %c1_i32 : i32
    %c4_i32 = arith.constant 4 : i32
    %1 = arith.muli %0, %c4_i32 : i32
    %c0_i32 = arith.constant 0 : i32
    %c0_i32_0 = arith.constant 0 : i32
    return %c0_i32, %1 : i32, i32
  }
  func.func @transform_2(%arg0: i32) -> (i32, i32) {
    %c0_i32 = arith.constant 0 : i32
    %c0_i32_0 = arith.constant 0 : i32
    %c0_i32_1 = arith.constant 0 : i32
    return %c0_i32, %c0_i32_0 : i32, i32
  }
  func.func @transform_3(%arg0: i32) -> (i32, i32, i32) {
    %c0_i32 = arith.constant 0 : i32
    %c0_i32_0 = arith.constant 0 : i32
    %c0_i32_1 = arith.constant 0 : i32
    return %c0_i32, %c0_i32_0, %arg0 : i32, i32, i32
  }
}

</mosaic_0001>

<bundles_post_ra>
// kernel: tpu_custom_call.1
= control target key start
LH: loop header
LB: loop body
LE: loop exit
PB: predicated region body
PF: predicated region fallthrough
CT: control target
= control target key end

     0   :  { %s2837_s0 = inlined_call_operand.hbm [shape: bf16[2,1152], index: 0, kind: input, shape index: {}]   ;;  %s2838_s1 = inlined_call_operand.hbm [shape: bf16[2,1152], index: 1, kind: input, shape index: {}]   ;;  %s2839_s2 = inlined_call_operand.hbm [shape: bf16[8,16], index: 2, kind: input, shape index: {}]   ;;  %s2840_s3 = inlined_call_operand.hbm [shape: f32[2,8,1024], index: 3, kind: output, shape index: {}]  }
   0x1   :  { %2851 = sst [smem:[#allocation18_spill]] %s2839_s2 }
   0x2   :  { %8 = vsyncpa [#allocation3], 0 }
   0x3   :  { %10 = vsyncpa [#allocation3 + $0x1], 0 }
   0x4   :  { %11 = vsyncpa [#allocation6], 0 }
   0x5   :  { %13 = vsyncpa [#allocation6 + $0x1], 0 }
   0x6   :  { %14 = vsyncpa [#allocation4], 0 }
   0x7   :  { %16 = vsyncpa [#allocation4 + $0x1], 0  ;;  %s1742_s12 = smov 0   ;;  %s1744_s13 = smov 0  }
   0x8   :  { %s1746_s14 = smov 0   ;;  %s1748_s15 = smov 0  }
   0x9   :  { %s1750_s16 = smov 0   ;;  %s1752_s17 = smov 0  }
   0xa   :  { %s1754_s18 = smov 0  }
   0xb LB: > { %2852 = sst [smem:[#allocation13_spill]] %s1696_s17  ;;  %s1776_s19 = sadd.s32 4294967295, %s1700_s18   ;;  %s1700_s18 = sphi %s1754_s18, %s2890_s18   ;;  %s1696_s17 = sphi %s1752_s17, %s2893_s17   ;;  %s1692_s16 = sphi %s1750_s16, %s2898_s16   ;;  %s1688_s15 = sphi %s1748_s15, %s2897_s15   ;;  %s1684_s14 = sphi %s1746_s14, %s2896_s14   ;;  %s1680_s13 = sphi %s1744_s13, %s2895_s13   ;;  %s1676_s12 = sphi %s1742_s12, %s2894_s12  }
   0xc   : > { %s1374_s20 = sadd.s32 4294967294, %s1700_s18   ;;  %s1780_s21 = sadd.s32 1, %s1700_s18  }
   0xd   : > { %2853 = sst [smem:[#allocation14_spill]] %s1780_s21  ;;  %s29_s22 = sadd.s32 1, %s1696_s17 }
   0xe   : > { %s26_s23 = ssub.s32 %s1700_s18, %s1780_s21  ;;  %p36_p0 = scmp.ne.s32.totalorder %s1696_s17, %s1692_s16 }
   0xf   : > { %p27_p1 = scmp.eq.s32.totalorder %s26_s23, 0  ;;  %p37_p2 = scmp.eq.s32.totalorder %s1700_s18, 0 }
  0x10   : > { %p42_p3 = scmp.ne.s32.totalorder %s1692_s16, %s1688_s15  ;;  %p2846_p4 = scmp.eq.s32.totalorder %s1776_s19, 0 }
  0x11   : > { %s1792_s24 = scalar_select %p27_p1, %s1696_s17, %s29_s22  }
  0x12   : > { %p1799_p5 = por %p37_p2, %p36_p0  ;;  %p1808_p6 = por %p2846_p4, %p42_p3 }
  0x13   : > { %2854 = sst [smem:[#allocation15_spill]] %s1792_s24  ;;  %s1813_s27 = sshll.u32 %s1700_s18, 2 }
  0x14   : > { %s2856_s26 = scalar_select %p1808_p6, 1, 0 }
  0x15   : > { %s59_s28 = sadd.s32 1, %s1684_s14  ;;  %s1404_s29 = sadd.s32 4, %s1813_s27 }
  0x16   : > { %p66_p7 = scmp.ne.s32.totalorder %s1684_s14, %s1680_s13  ;;  %s1406_s30 = sadd.s32 4, %s1404_s29 }
  0x17   : > { %p72_p8 = scmp.ne.s32.totalorder %s1680_s13, %s1676_s12  ;;  %s56_s4 = ssub.s32 %s1404_s29, %s1406_s30 }
  0x18   : > { %p1822_p9 = por %p66_p7, %p37_p2  ;;  %p57_p10 = scmp.eq.s32.totalorder %s56_s4, 0 }
  0x19   : > { %p1828_p11 = por %p72_p8, %p2846_p4  ;;  %p117_p12 = scmp.eq.s32.totalorder %s1776_s19, 1 }
  0x1a   : > { %p123_p13 = scmp.eq.s32.totalorder %s1374_s20, 1  ;;  %p1377_p7 = scmp.ge.s32.totalorder %s1700_s18, 1 }
  0x1b   : > { %s1834_s7 = scalar_select %p57_p10, %s1684_s14, %s59_s28  }
  0x1c   : > { %p1839_p1 = por %p117_p12, %p36_p0  ;;  %p1846_p2 = por %p123_p13, %p42_p3 }
  0x1d   : > { %2859 = sst [smem:[#allocation16_spill]] %s1834_s7  ;;  %p130_p6 = scmp.lt.s32.totalorder %s1700_s18, 3 }
  0x1e   : > { %s2860_s8 = scalar_select %p1839_p1, 1, 0 }
  0x1f   : > { %s2861_s9 = scalar_select %p1846_p2, 1, 0 }
  0x20   : > { %p1852_p8 = pnand %p1377_p7, %p130_p6  ;;  %s2863_s2 = sld [smem:[#allocation18_spill]] }
  0x21   : > { %s1702_s22 = smov [#allocation7]   ;;  %p2843_p6 = scmp.ge.s32.totalorder %s1700_s18, 2 }
  0x22   : > { %p1419_p0 = pneg %p1852_p8  ;;  %s144_s23 = sshll.u32 %s1702_s22, 4  ;;  %s145_s23 = int_to_ptr.vmem [resolvable:$true] %s144_s23 }
  0x23   : > { %151 = sbr.rel (%p2843_p6) target bundleno = 100 (0x64), region = 20 }
  0x24   : > { %p1420_p3 = pnand %p1419_p0, %p2846_p4 }
  0x26   : > { %s142_s20 = sshll.u32 %s2863_s2, 4  ;;  %s143_s20 = int_to_ptr.hbm [resolvable:$true] %s142_s20 }
  0x27   : > { %1422 = dma.hbm_to_vmem [thread:$0]  (!%p1420_p3), %s143_s20, 64, %s145_s23, [#allocation6]  }
  0x28   : > { %154 = sbr.rel (!%p1799_p5) target bundleno = 84 (0x54), region = 24 }
  0x2d   : > { %s155_s28 = sand.u32 1, %s1696_s17   ;;  %s161_s29 = ssub.s32 9, %s1813_s27 }
  0x2e   : > { %s1380_s30 = sshll.u32 %s155_s28, 2  ;;  %p162_p10 = scmp.lt.s32.totalorder %s161_s29, 4 }
  0x2f   : > { %s1873_s12 = scalar_lea.sflag [#allocation3], %s155_s28  ;;  %s159_s20 = scalar_lea.vmem [#allocation2], %s1380_s30 }
  0x30   : > { %s2900_s29 = smov (!%p162_p10, %s161_s29), 4 }
  0x31   : > { %s164_s4 = ssub.s32 4, %s2900_s29 }
  0x32   : > { %s165_s11 = sshll.u32 %s164_s4, 4 }
  0x33   : > { %166 = vsyncadd %s1873_s12, %s165_s11  ;;  %p1382_p5 = scmp.ne.s32.totalorder %s2900_s29, 0  ;;  %s168_s23 = scalar_lea.hbm %s2837_s0, %s1813_s27 }
  0x34   : > { %s2847_s2 = sshll.u32 %s2900_s29, 4  ;;  %s1882_s24 = sshll.u32 %s168_s23, 4  ;;  %s2844_s24 = int_to_ptr.hbm [resolvable:$true] %s1882_s24 }
  0x35   : > { %2864 = sst [smem:[#allocation17_spill]] %s1882_s24  ;;  %s1885_s28 = sshll.u32 %s159_s20, 4  ;;  %s173_s28 = int_to_ptr.vmem [resolvable:$true] %s1885_s28 }
  0x36   : > { %s1535_s30 = sshra.s32 %s2844_s24, 4  ;;  %s1537_s4 = sshrl.u32 %s2847_s2, 4  ;;  %s1536_s30 = int_to_ptr.hbm [resolvable:$true] %s1535_s30 }
  0x37   : > { %s1542_s11 = scalar_lea.hbm %s1536_s30, %s1537_s4  ;;  %s1546_s23 = scalar_lea.hbm %s2837_s0, 9 }
  0x38   : > { %p1543_p12 = scmp.ne.s32.totalorder %s1536_s30, %s1542_s11  ;;  %p1547_p0 = scmp.lt.s32.totalorder %s1536_s30, %s2837_s0 }
  0x39   : > { %p1548_p3 = scmp.lt.s32.totalorder %s1546_s23, %s1542_s11 }
  0x3a   : > { %p1544_p13 = pnand %p1543_p12, %p1382_p5 }
  0x3b   : > { %p1549_p10 = por %p1548_p3, %p1547_p0 }
  0x3c   : > { %p1545_p7 = pneg %p1544_p13 }
  0x3e   : > { %p1550_p6 = pnand %p1549_p10, %p1545_p7 }
  0x40   : > { %1553 = shalt.err (!%p1550_p6)
}
  0x41   : > { %s1554_s20 = sshra.s32 %s173_s28, 4  ;;  %s1703_s2 = smov [#allocation2]   ;;  %s1555_s20 = int_to_ptr.vmem [resolvable:$true] %s1554_s20 }
  0x42   : > { %s1561_s24 = scalar_lea.vmem %s1555_s20, %s1537_s4  ;;  %s1565_s21 = scalar_lea.vmem %s1703_s2, 8 }
  0x43   : > { %p1562_p4 = scmp.ne.s32.totalorder %s1555_s20, %s1561_s24  ;;  %p1567_p2 = scmp.lt.s32.totalorder %s1565_s21, %s1561_s24 }
  0x45   : > { %p1563_p12 = pnand %p1562_p4, %p1382_p5 }
  0x47   : > { %p1564_p13 = pneg %p1563_p12 }
  0x49   : > { %p1569_p1 = pnand %p1567_p2, %p1564_p13 }
  0x4b   : > { %1572 = shalt.err (!%p1569_p1)
}
  0x4c   : > { %s2865_s17 = sshll.u32 %s2900_s29, 4  ;;  %s2866_s7 = sld [smem:[#allocation17_spill]] }
  0x52   : > { %s2867_s30 = int_to_ptr.hbm [resolvable:$true] %s2866_s7 }
  0x53   : > { %175 = dma.hbm_to_vmem [thread:$0]  (%p1382_p5), %s2867_s30, %s2865_s17, %s173_s28, %s1873_s12  }
  0x54 PF: > { %s179_s4 = sand.u32 1, %s1700_s18   ;;  %s181_s11 = sand.u32 1, %s1684_s14  }
  0x55   : > { %s1309_s21 = scalar_lea.hbm %s2838_s1, %s1813_s27  ;;  %s182_s24 = scalar_lea.vmem [#allocation5], %s181_s11 }
  0x56   : > { %s191_s22 = sshll.u32 %s182_s24, 4  ;;  %s1310_s23 = scalar_lea.hbm %s1309_s21, 4  ;;  %s192_s22 = int_to_ptr.vmem [resolvable:$true] %s191_s22 }
  0x57   : > { %s189_s20 = sshll.u32 %s1310_s23, 4  ;;  %s180_s29 = scalar_lea.sflag [#allocation6], %s179_s4  ;;  %s190_s20 = int_to_ptr.hbm [resolvable:$true] %s189_s20 }
  0x58   : > { %s1574_s7 = sshra.s32 %s190_s20, 4  ;;  %s1580_s30 = scalar_lea.hbm %s2838_s1, 9  ;;  %s1575_s7 = int_to_ptr.hbm [resolvable:$true] %s1574_s7 }
  0x59   : > { %s1576_s12 = scalar_lea.hbm %s1575_s7, 1  ;;  %p1581_p6 = scmp.lt.s32.totalorder %s1575_s7, %s2838_s1 }
  0x5a   : > { %p1577_p4 = scmp.ne.s32.totalorder %s1575_s7, %s1576_s12  ;;  %p1582_p5 = scmp.lt.s32.totalorder %s1580_s30, %s1576_s12 }
  0x5c   : > { %p1578_p1 = pnand %p1577_p4, %p1822_p9  ;;  %p1583_p7 = por %p1582_p5, %p1581_p6 }
  0x5e   : > { %p1579_p2 = pneg %p1578_p1 }
  0x60   : > { %p1584_p0 = pnand %p1583_p7, %p1579_p2 }
  0x62   : > { %1587 = shalt.err (!%p1584_p0)
}
  0x63   : > { %1412 = dma.hbm_to_vmem [thread:$0]  (%p1822_p9), %s190_s20, 16, %s192_s22, %s180_s29  }
  0x64 PF: > { %200 = sbr.rel (%p1852_p8) target bundleno = 778 (0x30a), region = 32  ;;  %s1928_s4 = sand.u32 (!%p1852_p8), 1, %s1692_s16  }
  0x65   : > { %s1385_s11 = sshll.u32 (!%p1852_p8), %s1928_s4, 2  ;;  %s203_s2 = scalar_lea.sflag (!%p1852_p8), [#allocation3], %s1928_s4 }
  0x66   : > { %s206_s21 = scalar_lea.vmem (!%p1852_p8), [#allocation2], %s1385_s11  ;;  %p2868_p3 = scmp.ne.s32.totalorder (!%p1852_p8), %s2856_s26, 0 }
  0x69   : > { %1659 = dma.done.wait (%p2868_p3), %s203_s2, 64  }
  0x6a   : > { %1661 = vsyncadd (%p2868_p3), %s203_s2, 4294967232  ;;  %s212_s5 = sand.u32 1, %s1776_s19   ;;  %s214_s10 = sand.u32 1, %s1680_s13  }
  0x6b   : > { %s213_s24 = scalar_lea.sflag [#allocation6], %s212_s5  ;;  %s215_s22 = scalar_lea.vmem [#allocation5], %s214_s10 }
  0x6c   : > { %1663 = dma.done.wait (%p1828_p11), %s213_s24, 16  }
  0x6d   : > { %1665 = vsyncadd (%p1828_p11), %s213_s24, 4294967280  ;;  %p2869_p9 = scmp.eq.s32.totalorder %s1776_s19, 0 }
  0x6f   : > { %1667 = dma.done.wait (%p2869_p9), [#allocation6], 64   ;;  %p2870_p8 = pmov %p2869_p9 }
  0x70   : > { %v256_v0 = vld [vmem:[%s206_s21] sm:$0xf]  ;;  %v257_v1 = vld [vmem:[%s215_s22] sm:$0x1]  ;;  %vm270_vm0 = vcmask 1040384   ;;  %vm277_vm1 = vcmask 1041408  }
  0x71   : > { %1669 = vsyncadd (%p2870_p8), [#allocation6], 4294967232  ;;  %259 = vst [vmem:[#allocation1] ss:$9 sm:$0xff] %v256_v0  ;;  %v283_v5 = vrot.slane %v257_v1, 4  ;;  %vm285_vm2 = vcmask 1043459  }
  0x72   : > { %vm288_vm3 = vcmask 1042432   ;;  %s1704_s26 = smov 127   ;;  %s1705_s6 = smov 126   ;;  %vm273_vm4 = vcmask 1042434   ;;  %vm343_vm5 = vcmask 1039360   ;;  %vm380_vm8 = vcmask 1031168  }
  0x73   : > { %s1706_s23 = smov 125   ;;  %s1707_s20 = smov 124   ;;  %vm823_vm6 = vsmask.f32 256  ;;  %vm866_vm9 = vsmask.f32 1280 }
  0x74   : > { %s1708_s29 = smov 123   ;;  %vm2049_vm7 = vmand %vm270_vm0, %vm823_vm6  ;;  %s1709_s7 = smov 122   ;;  %vm409_vm10 = vcmask 1022976   ;;  %vm446_vm12 = vcmask 1014784   ;;  %vm909_vm13 = vsmask.f32 2304 }
  0x75   : > { %s1710_s12 = smov 121   ;;  %vm2149_vm11 = vmand %vm277_vm1, %vm866_vm9  ;;  %s1711_s28 = smov 120   ;;  %vm475_vm14 = vcmask 1006592   ;;  %vm995_vm6 = vcmask 1044480  }
  0x76   : > { %s1712_s17 = smov 119   ;;  %vm2250_vm15 = vmand %vm288_vm3, %vm909_vm13  ;;  %s1713_s30 = smov 118   ;;  %vm1040_vm13 = vsmask.f32 5376 }
  0x77   : > { %s1714_s25 = smov 117   ;;  %s1715_s27 = smov 116  }
  0x78   : > { %v260_v2 = vld [vmem:[#allocation1] sm:$0xff]  ;;  %v261_v3 = vld [vmem:[#allocation1 + $0x9] sm:$0xff]  ;;  %v1946_v4 = vld [vmem:[#allocation1 + $0x12] sm:$0xff]  ;;  %s1716_s11 = smov 115   ;;  %s1717_s2 = smov 114  }
  0x79   : > { %v1948_v6 = vld [vmem:[#allocation1 + $0x1b] sm:$0xff]  ;;  %v267_v7 = vrot.slane %v261_v3, 7  ;;  %v268_v8 = vrot.slane %v1946_v4, 6  ;;  %s1718_s21 = smov 113   ;;  %s1387_s5 = sshll.u32 %s1928_s4, 6 }
  0x7a   : > { %v269_v9 = vrot.slane %v1948_v6, 5  ;;  %s247_s10 = scalar_lea.vmem [#allocation8], %s1387_s5  ;;  %s1407_s24 = sshll.u32 %s1776_s19, 5 }
  0x7b   : > { %v1953_v10 = vsel %vm270_vm0, %v260_v2, %v267_v7  ;;  %p2887_p10 = scmp.ne.s32.totalorder %s2860_s8, 0 }
  0x7c   : > { %v284_v11 = vsel %vm277_vm1, %v1953_v10, %v268_v8  ;;  %v287_v12 = vsel %vm285_vm2, %v269_v9, %v283_v5  ;;  %v276_v33 = vsel %vm273_vm4, %v268_v8, %v269_v9  ;;  %vm952_vm2 = vsmask.f32 3328 }
  0x7d   : > { %v289_v13 = vsel %vm288_vm3, %v284_v11, %v287_v12  ;;  %v278_v34 = vsel %vm277_vm1, %v1953_v10, %v276_v33  ;;  %vm541_vm4 = vcmask 990208  }
  0x7e   : > { %v1389_v14 = vpack.i.b16 %v289_v13, %v289_v13  ;;  %v292_v18 = vunpack.i.h.s16 %v289_v13  ;;  %v281_v35 = vunpack.i.h.s16 %v278_v34  ;;  %v1388_v38 = vpack.i.b16 %v278_v34, %v278_v34 }
  0x80   : > { %v1962_v15 = vperm.slane %v1389_v14, 4  ;;  %v1964_v16 = vperm.slane %v1389_v14, 2  ;;  %v1966_v17 = vperm.slane %v1389_v14, 0  ;;  %v1971_v19 = vperm.slane %v1389_v14, 3 }
  0x81   : > { %v1973_v20 = vperm.slane %v1389_v14, 1  ;;  %v312_v21 = vpack.i.b16 %v292_v18, %v292_v18  ;;  %v294_v40 = vpack.i.b16 %v281_v35, %v281_v35  ;;  %v295_v41 = vperm.slane %v1388_v38, 0 }
  0x82   : > { %331 = vrot.lane.b32.xlu2 %v1962_v15, %s1704_s26  ;;  %327 = vrot.lane.b32.xlu1 %v1964_v16, %s1704_s26  ;;  %v297_v1 = vperm.slane %v1388_v38, 2  ;;  %v298_v2 = vperm.slane %v1388_v38, 3  ;;  %v296_v5 = vperm.slane %v1388_v38, 1 }
  0x83   : > { %323 = vrot.lane.b32.xlu0 %v1966_v17, %s1704_s26  ;;  %v1978_v22 = vperm.slane %v312_v21, 0  ;;  %v1980_v23 = vperm.slane %v312_v21, 1  ;;  %v1985_v24 = vperm.slane %v312_v21, 2  ;;  %v1987_v25 = vperm.slane %v312_v21, 3 }
  0x84   : > { %v1989_v26 = vperm.slane %v312_v21, 4  ;;  %v299_v44 = vperm.slane %v294_v40, 0  ;;  %v300_v53 = vperm.slane %v294_v40, 1  ;;  %v301_v54 = vperm.slane %v294_v40, 2 }
  0x85   : > { %v302_v55 = vperm.slane %v294_v40, 3 }
  0x8a   : > { %329 = vrot.lane.b32.xlu1 %v1971_v19, %s1704_s26  ;;  %362 = vrot.lane.b32.xlu2 %v1973_v20, %s1705_s6 }
  0x8b   : > { %325 = vrot.lane.b32.xlu0 %v1973_v20, %s1704_s26 }
  0x92   : > { %360 = vrot.lane.b32.xlu1 %v1966_v17, %s1705_s6  ;;  %333 = vrot.lane.b32.xlu2 %v1978_v22, %s1704_s26 }
  0x93   : > { %335 = vrot.lane.b32.xlu0 %v1980_v23, %s1704_s26 }
  0x9a   : > { %337 = vrot.lane.b32.xlu1 %v1985_v24, %s1704_s26  ;;  %339 = vrot.lane.b32.xlu2 %v1987_v25, %s1704_s26 }
  0x9b   : > { %341 = vrot.lane.b32.xlu0 %v1989_v26, %s1704_s26 }
  0xa2   : > { %366 = vrot.lane.b32.xlu1 %v1971_v19, %s1705_s6  ;;  %368 = vrot.lane.b32.xlu2 %v1962_v15, %s1705_s6 }
  0xa3   : > { %364 = vrot.lane.b32.xlu0 %v1964_v16, %s1705_s6 }
  0xaa   : > { %372 = vrot.lane.b32.xlu1 %v1980_v23, %s1705_s6  ;;  %374 = vrot.lane.b32.xlu2 %v1985_v24, %s1705_s6 }
  0xab   : > { %370 = vrot.lane.b32.xlu0 %v1978_v22, %s1705_s6 }
  0xb2   : > { %378 = vrot.lane.b32.xlu1 %v1989_v26, %s1705_s6  ;;  %389 = vrot.lane.b32.xlu2 %v1966_v17, %s1706_s23 }
  0xb3   : > { %376 = vrot.lane.b32.xlu0 %v1987_v25, %s1705_s6  ;;  %s1267_s6 = scalar_lea.hbm %s2840_s3, %s1407_s24 }
  0xba   : > { %393 = vrot.lane.b32.xlu1 %v1964_v16, %s1706_s23  ;;  %395 = vrot.lane.b32.xlu2 %v1971_v19, %s1706_s23 }
  0xbb   : > { %391 = vrot.lane.b32.xlu0 %v1973_v20, %s1706_s23 }
  0xc2   : > { %399 = vrot.lane.b32.xlu1 %v1978_v22, %s1706_s23  ;;  %401 = vrot.lane.b32.xlu2 %v1980_v23, %s1706_s23 }
  0xc3   : > { %397 = vrot.lane.b32.xlu0 %v1962_v15, %s1706_s23 }
  0xca   : > { %405 = vrot.lane.b32.xlu1 %v1987_v25, %s1706_s23  ;;  %407 = vrot.lane.b32.xlu2 %v1989_v26, %s1706_s23 }
  0xcb   : > { %403 = vrot.lane.b32.xlu0 %v1985_v24, %s1706_s23  ;;  %s1268_s23 = sshll.u32 %s247_s10, 4  ;;  %s1269_s23 = int_to_ptr.vmem [resolvable:$true] %s1268_s23 }
  0xd2   : > { %428 = vrot.lane.b32.xlu1 %v1973_v20, %s1707_s20  ;;  %430 = vrot.lane.b32.xlu2 %v1964_v16, %s1707_s20 }
  0xd3   : > { %426 = vrot.lane.b32.xlu0 %v1966_v17, %s1707_s20 }
  0xda   : > { %434 = vrot.lane.b32.xlu1 %v1962_v15, %s1707_s20  ;;  %436 = vrot.lane.b32.xlu2 %v1978_v22, %s1707_s20 }
  0xdb   : > { %432 = vrot.lane.b32.xlu0 %v1971_v19, %s1707_s20 }
  0xdc   : > { %v2018_v27 = vpop.permute.xlu2 %331 }
  0xe2   : > { %440 = vrot.lane.b32.xlu1 %v1985_v24, %s1707_s20  ;;  %442 = vrot.lane.b32.xlu2 %v1987_v25, %s1707_s20 }
  0xe3   : > { %438 = vrot.lane.b32.xlu0 %v1980_v23, %s1707_s20 }
  0xe4   : > { %v2023_v28 = vpop.permute.xlu2 %362 }
  0xea   : > { %455 = vrot.lane.b32.xlu1 %v1966_v17, %s1708_s29  ;;  %457 = vrot.lane.b32.xlu2 %v1973_v20, %s1708_s29 }
  0xeb   : > { %444 = vrot.lane.b32.xlu0 %v1989_v26, %s1707_s20  ;;  %s1270_s20 = sshll.u32 %s1267_s6, 4  ;;  %s1271_s20 = int_to_ptr.hbm [resolvable:$true] %s1270_s20 }
  0xec   : > { %v334_v29 = vpop.permute.xlu2 %333 }
  0xf2   : > { %461 = vrot.lane.b32.xlu1 %v1971_v19, %s1708_s29  ;;  %463 = vrot.lane.b32.xlu2 %v1962_v15, %s1708_s29 }
  0xf3   : > { %459 = vrot.lane.b32.xlu0 %v1964_v16, %s1708_s29 }
  0xf4   : > { %v328_v30 = vpop.permute.xlu1 %327  ;;  %v340_v31 = vpop.permute.xlu2 %339 }
  0xf5   : > { %v324_v32 = vpop.permute.xlu0 %323 }
  0xfa   : > { %467 = vrot.lane.b32.xlu1 %v1980_v23, %s1708_s29  ;;  %469 = vrot.lane.b32.xlu2 %v1985_v24, %s1708_s29 }
  0xfb   : > { %465 = vrot.lane.b32.xlu0 %v1978_v22, %s1708_s29 }
  0xfc   : > { %v330_v36 = vpop.permute.xlu1 %329  ;;  %v369_v37 = vpop.permute.xlu2 %368 }
  0xfd   : > { %v326_v39 = vpop.permute.xlu0 %325  ;;  %v346_v3 = vsel %vm343_vm5, %v328_v30, %v330_v36  ;;  %v347_v4 = vsel %vm343_vm5, %v330_v36, %v2018_v27 }
  0xfe   : > { %v344_v43 = vsel %vm343_vm5, %v324_v32, %v326_v39  ;;  %v345_v6 = vsel %vm343_vm5, %v326_v39, %v328_v30  ;;  %v827_v9 = vsel %vm2049_vm7, %v297_v1, %v346_v3  ;;  %v828_v10 = vsel %vm2049_vm7, %v298_v2, %v347_v4 }
  0xff   : > { %v825_v47 = vsel %vm2049_vm7, %v295_v41, %v344_v43  ;;  %v826_v13 = vsel %vm2049_vm7, %v296_v5, %v345_v6 }
 0x102   : > { %473 = vrot.lane.b32.xlu1 %v1989_v26, %s1708_s29  ;;  %492 = vrot.lane.b32.xlu2 %v1966_v17, %s1709_s7 }
 0x103   : > { %471 = vrot.lane.b32.xlu0 %v1987_v25, %s1708_s29  ;;  %s1256_s29 = scalar_lea.sflag [#allocation4], %s1928_s4 }
 0x104   : > { %v361_v45 = vpop.permute.xlu1 %360  ;;  %v375_v46 = vpop.permute.xlu2 %374 }
 0x105   : > { %v381_v48 = vsel %vm380_vm8, %v361_v45, %v2023_v28  ;;  %v336_v49 = vpop.permute.xlu0 %335 }
 0x106   : > { %v2065_v50 = vsel %vm270_vm0, %v825_v47, %v381_v48  ;;  %v348_v51 = vsel %vm343_vm5, %v334_v29, %v336_v49 }
 0x107   : > { %v829_v52 = vsel %vm2049_vm7, %v299_v44, %v348_v51 }
 0x10a   : > { %496 = vrot.lane.b32.xlu1 %v1964_v16, %s1709_s7  ;;  %498 = vrot.lane.b32.xlu2 %v1971_v19, %s1709_s7 }
 0x10b   : > { %494 = vrot.lane.b32.xlu0 %v1973_v20, %s1709_s7 }
 0x10c   : > { %v338_v56 = vpop.permute.xlu1 %337  ;;  %v390_v57 = vpop.permute.xlu2 %389 }
 0x10d   : > { %v349_v58 = vsel %vm343_vm5, %v336_v49, %v338_v56  ;;  %v350_v59 = vsel %vm343_vm5, %v338_v56, %v340_v31  ;;  %v342_v60 = vpop.permute.xlu0 %341 }
 0x10e   : > { %v830_v61 = vsel %vm2049_vm7, %v300_v53, %v349_v58  ;;  %v831_v62 = vsel %vm2049_vm7, %v301_v54, %v350_v59  ;;  %v351_v63 = vsel %vm343_vm5, %v340_v31, %v342_v60 }
 0x10f   : > { %v832_v0 = vsel %vm2049_vm7, %v302_v55, %v351_v63  ;;  %vm996_vm7 = vsmask.f32 4352 }
 0x110   : > { %vm2482_vm9 = vmand %vm995_vm6, %vm996_vm7 }
 0x112   : > { %502 = vrot.lane.b32.xlu1 %v1978_v22, %s1709_s7  ;;  %504 = vrot.lane.b32.xlu2 %v1980_v23, %s1709_s7 }
 0x113   : > { %500 = vrot.lane.b32.xlu0 %v1962_v15, %s1709_s7 }
 0x114   : > { %v367_v7 = vpop.permute.xlu1 %366  ;;  %v396_v8 = vpop.permute.xlu2 %395 }
 0x115   : > { %v384_v11 = vsel %vm380_vm8, %v367_v7, %v369_v37  ;;  %v365_v12 = vpop.permute.xlu0 %364 }
 0x116   : > { %v2103_v14 = vsel %vm270_vm0, %v828_v10, %v384_v11  ;;  %v382_v18 = vsel %vm380_vm8, %v2023_v28, %v365_v12  ;;  %v383_v21 = vsel %vm380_vm8, %v365_v12, %v367_v7 }
 0x117   : > { %v2109_v27 = vsel %vm270_vm0, %v826_v13, %v382_v18  ;;  %v2112_v29 = vsel %vm270_vm0, %v827_v9, %v383_v21 }
 0x11a   : > { %508 = vrot.lane.b32.xlu1 %v1987_v25, %s1709_s7  ;;  %510 = vrot.lane.b32.xlu2 %v1989_v26, %s1709_s7 }
 0x11b   : > { %506 = vrot.lane.b32.xlu0 %v1985_v24, %s1709_s7  ;;  %s1616_s7 = sshra.s32 %s1271_s20, 4  ;;  %s1617_s7 = int_to_ptr.hbm [resolvable:$true] %s1616_s7 }
 0x11c   : > { %v373_v30 = vpop.permute.xlu1 %372  ;;  %v402_v31 = vpop.permute.xlu2 %401  ;;  %p1623_p4 = scmp.lt.s32.totalorder %s1617_s7, %s2840_s3 }
 0x11d   : > { %v386_v28 = vsel %vm380_vm8, %v373_v30, %v375_v46  ;;  %v371_v32 = vpop.permute.xlu0 %370 }
 0x11e   : > { %v2122_v33 = vsel %vm270_vm0, %v830_v61, %v386_v28  ;;  %v385_v34 = vsel %vm380_vm8, %v371_v32, %v373_v30 }
 0x11f   : > { %v2126_v35 = vsel %vm270_vm0, %v829_v52, %v385_v34 }
 0x122   : > { %523 = vrot.lane.b32.xlu1 %v1973_v20, %s1710_s12  ;;  %525 = vrot.lane.b32.xlu2 %v1964_v16, %s1710_s12 }
 0x123   : > { %521 = vrot.lane.b32.xlu0 %v1966_v17, %s1710_s12 }
 0x124   : > { %v379_v36 = vpop.permute.xlu1 %378  ;;  %v408_v37 = vpop.permute.xlu2 %407 }
 0x125   : > { %v377_v38 = vpop.permute.xlu0 %376 }
 0x126   : > { %v387_v39 = vsel %vm380_vm8, %v375_v46, %v377_v38  ;;  %v388_v40 = vsel %vm380_vm8, %v377_v38, %v379_v36  ;;  %vm607_vm8 = vcmask 973824  }
 0x127   : > { %v2137_v41 = vsel %vm270_vm0, %v831_v62, %v387_v39  ;;  %v2140_v42 = vsel %vm270_vm0, %v832_v0, %v388_v40  ;;  %vm512_vm0 = vcmask 998400  }
 0x12a   : > { %529 = vrot.lane.b32.xlu1 %v1962_v15, %s1710_s12  ;;  %531 = vrot.lane.b32.xlu2 %v1978_v22, %s1710_s12 }
 0x12b   : > { %527 = vrot.lane.b32.xlu0 %v1971_v19, %s1710_s12 }
 0x12c   : > { %v394_v44 = vpop.permute.xlu1 %393  ;;  %v431_v45 = vpop.permute.xlu2 %430 }
 0x12d   : > { %v412_v46 = vsel %vm409_vm10, %v394_v44, %v396_v8  ;;  %v392_v47 = vpop.permute.xlu0 %391 }
 0x12e   : > { %v870_v48 = vsel %vm2149_vm11, %v2112_v29, %v412_v46  ;;  %v410_v49 = vsel %vm409_vm10, %v390_v57, %v392_v47  ;;  %v411_v51 = vsel %vm409_vm10, %v392_v47, %v394_v44 }
 0x12f   : > { %v868_v52 = vsel %vm2149_vm11, %v2065_v50, %v410_v49  ;;  %v869_v53 = vsel %vm2149_vm11, %v2109_v27, %v411_v51 }
 0x132   : > { %535 = vrot.lane.b32.xlu1 %v1985_v24, %s1710_s12  ;;  %537 = vrot.lane.b32.xlu2 %v1987_v25, %s1710_s12 }
 0x133   : > { %533 = vrot.lane.b32.xlu0 %v1980_v23, %s1710_s12 }
 0x134   : > { %v400_v54 = vpop.permute.xlu1 %399  ;;  %v437_v55 = vpop.permute.xlu2 %436 }
 0x135   : > { %v414_v56 = vsel %vm409_vm10, %v400_v54, %v402_v31  ;;  %v398_v57 = vpop.permute.xlu0 %397 }
 0x136   : > { %v872_v50 = vsel %vm2149_vm11, %v2126_v35, %v414_v56  ;;  %v413_v58 = vsel %vm409_vm10, %v396_v8, %v398_v57 }
 0x137   : > { %v871_v59 = vsel %vm2149_vm11, %v2103_v14, %v413_v58 }
 0x13a   : > { %558 = vrot.lane.b32.xlu1 %v1966_v17, %s1711_s28  ;;  %560 = vrot.lane.b32.xlu2 %v1973_v20, %s1711_s28 }
 0x13b   : > { %539 = vrot.lane.b32.xlu0 %v1989_v26, %s1710_s12  ;;  %s1618_s12 = scalar_lea.hbm %s1617_s7, 64 }
 0x13c   : > { %v406_v60 = vpop.permute.xlu1 %405  ;;  %v443_v61 = vpop.permute.xlu2 %442  ;;  %p1619_p11 = scmp.ne.s32.totalorder %s1617_s7, %s1618_s12 }
 0x13d   : > { %v417_v62 = vsel %vm409_vm10, %v406_v60, %v408_v37  ;;  %v404_v63 = vpop.permute.xlu0 %403 }
 0x13e   : > { %v875_v0 = vsel %vm2149_vm11, %v2140_v42, %v417_v62  ;;  %v415_v1 = vsel %vm409_vm10, %v402_v31, %v404_v63  ;;  %v416_v2 = vsel %vm409_vm10, %v404_v63, %v406_v60  ;;  %vm644_vm10 = vcmask 965632   ;;  %p1620_p12 = pnand %p1619_p11, %p2887_p10 }
 0x13f   : > { %v873_v3 = vsel %vm2149_vm11, %v2122_v33, %v415_v1  ;;  %v874_v4 = vsel %vm2149_vm11, %v2137_v41, %v416_v2  ;;  %vm673_vm11 = vcmask 957440  }
 0x140   : > { %p1621_p13 = pneg %p1620_p12 }
 0x142   : > { %564 = vrot.lane.b32.xlu1 %v1971_v19, %s1711_s28  ;;  %566 = vrot.lane.b32.xlu2 %v1962_v15, %s1711_s28 }
 0x143   : > { %562 = vrot.lane.b32.xlu0 %v1964_v16, %s1711_s28 }
 0x144   : > { %v429_v5 = vpop.permute.xlu1 %428  ;;  %v458_v6 = vpop.permute.xlu2 %457 }
 0x145   : > { %v448_v7 = vsel %vm446_vm12, %v429_v5, %v431_v45  ;;  %v427_v8 = vpop.permute.xlu0 %426 }
 0x146   : > { %v2205_v9 = vsel %vm277_vm1, %v869_v53, %v448_v7  ;;  %v447_v10 = vsel %vm446_vm12, %v427_v8, %v429_v5 }
 0x147   : > { %v2209_v11 = vsel %vm277_vm1, %v868_v52, %v447_v10 }
 0x14a   : > { %570 = vrot.lane.b32.xlu1 %v1980_v23, %s1711_s28  ;;  %572 = vrot.lane.b32.xlu2 %v1985_v24, %s1711_s28 }
 0x14b   : > { %568 = vrot.lane.b32.xlu0 %v1978_v22, %s1711_s28 }
 0x14c   : > { %v435_v12 = vpop.permute.xlu1 %434  ;;  %v464_v13 = vpop.permute.xlu2 %463 }
 0x14d   : > { %v433_v14 = vpop.permute.xlu0 %432 }
 0x14e   : > { %v449_v18 = vsel %vm446_vm12, %v431_v45, %v433_v14  ;;  %v450_v21 = vsel %vm446_vm12, %v433_v14, %v435_v12 }
 0x14f   : > { %v2220_v27 = vsel %vm277_vm1, %v870_v48, %v449_v18  ;;  %v2223_v29 = vsel %vm277_vm1, %v871_v59, %v450_v21 }
 0x152   : > { %576 = vrot.lane.b32.xlu1 %v1989_v26, %s1711_s28  ;;  %587 = vrot.lane.b32.xlu2 %v1966_v17, %s1712_s17 }
 0x153   : > { %574 = vrot.lane.b32.xlu0 %v1987_v25, %s1711_s28 }
 0x154   : > { %v441_v30 = vpop.permute.xlu1 %440  ;;  %v470_v31 = vpop.permute.xlu2 %469 }
 0x155   : > { %v453_v28 = vsel %vm446_vm12, %v441_v30, %v443_v61  ;;  %v439_v32 = vpop.permute.xlu0 %438 }
 0x156   : > { %v2233_v33 = vsel %vm277_vm1, %v874_v4, %v453_v28  ;;  %v451_v34 = vsel %vm446_vm12, %v437_v55, %v439_v32  ;;  %v452_v35 = vsel %vm446_vm12, %v439_v32, %v441_v30 }
 0x157   : > { %v2238_v36 = vsel %vm277_vm1, %v872_v50, %v451_v34  ;;  %v2241_v37 = vsel %vm277_vm1, %v873_v3, %v452_v35 }
 0x15a   : > { %591 = vrot.lane.b32.xlu1 %v1964_v16, %s1712_s17  ;;  %593 = vrot.lane.b32.xlu2 %v1971_v19, %s1712_s17 }
 0x15b   : > { %589 = vrot.lane.b32.xlu0 %v1973_v20, %s1712_s17 }
 0x15c   : > { %v456_v39 = vpop.permute.xlu1 %455  ;;  %v493_v40 = vpop.permute.xlu2 %492 }
 0x15d   : > { %v476_v41 = vsel %vm475_vm14, %v456_v39, %v458_v6  ;;  %v445_v42 = vpop.permute.xlu0 %444 }
 0x15e   : > { %v911_v43 = vsel %vm2250_vm15, %v2209_v11, %v476_v41  ;;  %v454_v44 = vsel %vm446_vm12, %v443_v61, %v445_v42  ;;  %vm1039_vm12 = vcmask 1045504  }
 0x15f   : > { %v2260_v45 = vsel %vm277_vm1, %v875_v0, %v454_v44  ;;  %vm951_vm1 = vcmask 1043456  }
 0x160   : > { %vm2365_vm5 = vmand %vm951_vm1, %vm952_vm2 }
 0x161   : > { %vm2557_vm2 = vmand %vm1039_vm12, %vm1040_vm13  ;;  %vm805_vm13 = vcmask 924672  }
 0x162   : > { %628 = vrot.lane.b32.xlu1 %v1964_v16, %s1713_s30  ;;  %630 = vrot.lane.b32.xlu2 %v1971_v19, %s1713_s30 }
 0x163   : > { %595 = vrot.lane.b32.xlu0 %v1962_v15, %s1712_s17 }
 0x164   : > { %v462_v46 = vpop.permute.xlu1 %461  ;;  %v499_v47 = vpop.permute.xlu2 %498 }
 0x165   : > { %v479_v48 = vsel %vm475_vm14, %v462_v46, %v464_v13  ;;  %v460_v49 = vpop.permute.xlu0 %459 }
 0x166   : > { %v914_v51 = vsel %vm2250_vm15, %v2223_v29, %v479_v48  ;;  %v477_v52 = vsel %vm475_vm14, %v458_v6, %v460_v49  ;;  %v478_v53 = vsel %vm475_vm14, %v460_v49, %v462_v46 }
 0x167   : > { %v912_v54 = vsel %vm2250_vm15, %v2205_v9, %v477_v52  ;;  %v913_v55 = vsel %vm2250_vm15, %v2220_v27, %v478_v53 }
 0x16a   : > { %657 = vrot.lane.b32.xlu1 %v1964_v16, %s1714_s25  ;;  %659 = vrot.lane.b32.xlu2 %v1971_v19, %s1714_s25 }
 0x16b   : > { %632 = vrot.lane.b32.xlu0 %v1962_v15, %s1713_s30 }
 0x16c   : > { %v468_v56 = vpop.permute.xlu1 %467  ;;  %v505_v57 = vpop.permute.xlu2 %504 }
 0x16d   : > { %v481_v50 = vsel %vm475_vm14, %v468_v56, %v470_v31  ;;  %v466_v58 = vpop.permute.xlu0 %465 }
 0x16e   : > { %v916_v59 = vsel %vm2250_vm15, %v2241_v37, %v481_v50  ;;  %v480_v60 = vsel %vm475_vm14, %v466_v58, %v468_v56 }
 0x16f   : > { %v915_v61 = vsel %vm2250_vm15, %v2238_v36, %v480_v60 }
 0x172   : > { %694 = vrot.lane.b32.xlu1 %v1964_v16, %s1715_s27  ;;  %696 = vrot.lane.b32.xlu2 %v1971_v19, %s1715_s27 }
 0x173   : > { %661 = vrot.lane.b32.xlu0 %v1962_v15, %s1714_s25 }
 0x174   : > { %v474_v62 = vpop.permute.xlu1 %473  ;;  %v511_v63 = vpop.permute.xlu2 %510 }
 0x175   : > { %v472_v0 = vpop.permute.xlu0 %471 }
 0x176   : > { %v482_v1 = vsel %vm475_vm14, %v470_v31, %v472_v0  ;;  %v483_v2 = vsel %vm475_vm14, %v472_v0, %v474_v62  ;;  %vm710_vm14 = vcmask 949248  }
 0x177   : > { %v917_v3 = vsel %vm2250_vm15, %v2233_v33, %v482_v1  ;;  %v918_v4 = vsel %vm2250_vm15, %v2260_v45, %v483_v2  ;;  %vm739_vm15 = vcmask 941056  }
 0x17a   : > { %723 = vrot.lane.b32.xlu1 %v1964_v16, %s1716_s11  ;;  %725 = vrot.lane.b32.xlu2 %v1971_v19, %s1716_s11 }
 0x17b   : > { %698 = vrot.lane.b32.xlu0 %v1962_v15, %s1715_s27 }
 0x17c   : > { %v497_v5 = vpop.permute.xlu1 %496  ;;  %v526_v6 = vpop.permute.xlu2 %525 }
 0x17d   : > { %v515_v7 = vsel %vm512_vm0, %v497_v5, %v499_v47  ;;  %v495_v8 = vpop.permute.xlu0 %494 }
 0x17e   : > { %v2316_v9 = vsel %vm288_vm3, %v913_v55, %v515_v7  ;;  %v513_v10 = vsel %vm512_vm0, %v493_v40, %v495_v8  ;;  %v514_v11 = vsel %vm512_vm0, %v495_v8, %v497_v5 }
 0x17f   : > { %v2321_v12 = vsel %vm288_vm3, %v911_v43, %v513_v10  ;;  %v2324_v13 = vsel %vm288_vm3, %v912_v54, %v514_v11 }
 0x182   : > { %760 = vrot.lane.b32.xlu1 %v1964_v16, %s1717_s2  ;;  %762 = vrot.lane.b32.xlu2 %v1971_v19, %s1717_s2 }
 0x183   : > { %727 = vrot.lane.b32.xlu0 %v1962_v15, %s1716_s11 }
 0x184   : > { %v503_v14 = vpop.permute.xlu1 %502  ;;  %v532_v18 = vpop.permute.xlu2 %531 }
 0x185   : > { %v517_v21 = vsel %vm512_vm0, %v503_v14, %v505_v57  ;;  %v501_v27 = vpop.permute.xlu0 %500 }
 0x186   : > { %v2334_v29 = vsel %vm288_vm3, %v915_v61, %v517_v21  ;;  %v516_v30 = vsel %vm512_vm0, %v499_v47, %v501_v27 }
 0x187   : > { %v2338_v31 = vsel %vm288_vm3, %v914_v51, %v516_v30 }
 0x18a   : > { %789 = vrot.lane.b32.xlu1 %v1964_v16, %s1718_s21  ;;  %791 = vrot.lane.b32.xlu2 %v1971_v19, %s1718_s21 }
 0x18b   : > { %764 = vrot.lane.b32.xlu0 %v1962_v15, %s1717_s2 }
 0x18c   : > { %v509_v28 = vpop.permute.xlu1 %508  ;;  %v538_v32 = vpop.permute.xlu2 %537 }
 0x18d   : > { %v520_v33 = vsel %vm512_vm0, %v509_v28, %v511_v63  ;;  %v507_v34 = vpop.permute.xlu0 %506 }
 0x18e   : > { %v2348_v35 = vsel %vm288_vm3, %v918_v4, %v520_v33  ;;  %v518_v36 = vsel %vm512_vm0, %v505_v57, %v507_v34  ;;  %v519_v37 = vsel %vm512_vm0, %v507_v34, %v509_v28  ;;  %vm1083_vm0 = vcmask 1046528  }
 0x18f   : > { %v2353_v16 = vsel %vm288_vm3, %v916_v59, %v518_v36  ;;  %v2356_v19 = vsel %vm288_vm3, %v917_v3, %v519_v37  ;;  %vm578_vm3 = vcmask 982016  }
 0x192   : > { %624 = vrot.lane.b32.xlu1 %v1966_v17, %s1713_s30  ;;  %626 = vrot.lane.b32.xlu2 %v1973_v20, %s1713_s30 }
 0x193   : > { %793 = vrot.lane.b32.xlu0 %v1962_v15, %s1718_s21 }
 0x194   : > { %v524_v39 = vpop.permute.xlu1 %523  ;;  %v561_v40 = vpop.permute.xlu2 %560 }
 0x195   : > { %v543_v41 = vsel %vm541_vm4, %v524_v39, %v526_v6  ;;  %v522_v42 = vpop.permute.xlu0 %521 }
 0x196   : > { %v955_v43 = vsel %vm2365_vm5, %v2324_v13, %v543_v41  ;;  %v542_v44 = vsel %vm541_vm4, %v522_v42, %v524_v39 }
 0x197   : > { %v954_v15 = vsel %vm2365_vm5, %v2321_v12, %v542_v44 }
 0x19a   : > { %655 = vrot.lane.b32.xlu1 %v1973_v20, %s1714_s25  ;;  %690 = vrot.lane.b32.xlu2 %v1966_v17, %s1715_s27 }
 0x19b   : > { %653 = vrot.lane.b32.xlu0 %v1966_v17, %s1714_s25 }
 0x19c   : > { %v530_v45 = vpop.permute.xlu1 %529  ;;  %v567_v46 = vpop.permute.xlu2 %566 }
 0x19d   : > { %v528_v47 = vpop.permute.xlu0 %527 }
 0x19e   : > { %v544_v48 = vsel %vm541_vm4, %v526_v6, %v528_v47  ;;  %v545_v49 = vsel %vm541_vm4, %v528_v47, %v530_v45 }
 0x19f   : > { %v956_v51 = vsel %vm2365_vm5, %v2316_v9, %v544_v48  ;;  %v957_v52 = vsel %vm2365_vm5, %v2338_v31, %v545_v49 }
 0x1a2   : > { %719 = vrot.lane.b32.xlu1 %v1966_v17, %s1716_s11  ;;  %721 = vrot.lane.b32.xlu2 %v1973_v20, %s1716_s11 }
 0x1a3   : > { %692 = vrot.lane.b32.xlu0 %v1973_v20, %s1715_s27 }
 0x1a4   : > { %v536_v53 = vpop.permute.xlu1 %535  ;;  %v573_v54 = vpop.permute.xlu2 %572 }
 0x1a5   : > { %v548_v55 = vsel %vm541_vm4, %v536_v53, %v538_v32  ;;  %v534_v56 = vpop.permute.xlu0 %533 }
 0x1a6   : > { %v960_v57 = vsel %vm2365_vm5, %v2356_v19, %v548_v55  ;;  %v546_v50 = vsel %vm541_vm4, %v532_v18, %v534_v56  ;;  %v547_v58 = vsel %vm541_vm4, %v534_v56, %v536_v53 }
 0x1a7   : > { %v958_v59 = vsel %vm2365_vm5, %v2334_v29, %v546_v50  ;;  %v959_v60 = vsel %vm2365_vm5, %v2353_v16, %v547_v58 }
 0x1aa   : > { %758 = vrot.lane.b32.xlu1 %v1973_v20, %s1717_s2  ;;  %785 = vrot.lane.b32.xlu2 %v1966_v17, %s1718_s21 }
 0x1ab   : > { %756 = vrot.lane.b32.xlu0 %v1966_v17, %s1717_s2 }
 0x1ac   : > { %v559_v61 = vpop.permute.xlu1 %558  ;;  %v588_v62 = vpop.permute.xlu2 %587 }
 0x1ad   : > { %v579_v63 = vsel %vm578_vm3, %v559_v61, %v561_v40  ;;  %v540_v0 = vpop.permute.xlu0 %539 }
 0x1ae   : > { %v2417_v1 = vsel %vm951_vm1, %v954_v15, %v579_v63  ;;  %v549_v2 = vsel %vm541_vm4, %v538_v32, %v540_v0  ;;  %vm776_vm4 = vcmask 932864  }
 0x1af   : > { %v961_v3 = vsel %vm2365_vm5, %v2348_v35, %v549_v2  ;;  %vm1127_vm5 = vcmask 1047552  }
 0x1b2   : > { %601 = vrot.lane.b32.xlu1 %v1985_v24, %s1712_s17  ;;  %603 = vrot.lane.b32.xlu2 %v1987_v25, %s1712_s17 }
 0x1b3   : > { %787 = vrot.lane.b32.xlu0 %v1973_v20, %s1718_s21 }
 0x1b4   : > { %v565_v17 = vpop.permute.xlu1 %564  ;;  %v2429_v4 = vpop.permute.xlu2 %593 }
 0x1b5   : > { %v582_v5 = vsel %vm578_vm3, %v565_v17, %v567_v46  ;;  %v563_v6 = vpop.permute.xlu0 %562 }
 0x1b6   : > { %v2433_v7 = vsel %vm951_vm1, %v957_v52, %v582_v5  ;;  %v580_v8 = vsel %vm578_vm3, %v561_v40, %v563_v6  ;;  %v581_v9 = vsel %vm578_vm3, %v563_v6, %v565_v17 }
 0x1b7   : > { %v2438_v10 = vsel %vm951_vm1, %v955_v43, %v580_v8  ;;  %v2441_v11 = vsel %vm951_vm1, %v956_v51, %v581_v9 }
 0x1ba   : > { %638 = vrot.lane.b32.xlu1 %v1985_v24, %s1713_s30  ;;  %640 = vrot.lane.b32.xlu2 %v1987_v25, %s1713_s30 }
 0x1bb   : > { %605 = vrot.lane.b32.xlu0 %v1989_v26, %s1712_s17 }
 0x1bc   : > { %v571_v20 = vpop.permute.xlu1 %570  ;;  %v2449_v12 = vpop.permute.xlu2 %630 }
 0x1bd   : > { %v584_v13 = vsel %vm578_vm3, %v571_v20, %v573_v54  ;;  %v569_v14 = vpop.permute.xlu0 %568 }
 0x1be   : > { %v2453_v18 = vsel %vm951_vm1, %v959_v60, %v584_v13  ;;  %v583_v21 = vsel %vm578_vm3, %v569_v14, %v571_v20 }
 0x1bf   : > { %v2457_v27 = vsel %vm951_vm1, %v958_v59, %v583_v21 }
 0x1c2   : > { %667 = vrot.lane.b32.xlu1 %v1985_v24, %s1714_s25  ;;  %669 = vrot.lane.b32.xlu2 %v1987_v25, %s1714_s25 }
 0x1c3   : > { %642 = vrot.lane.b32.xlu0 %v1989_v26, %s1713_s30 }
 0x1c4   : > { %v577_v29 = vpop.permute.xlu1 %576  ;;  %v2465_v30 = vpop.permute.xlu2 %659 }
 0x1c5   : > { %v575_v31 = vpop.permute.xlu0 %574 }
 0x1c6   : > { %v585_v28 = vsel %vm578_vm3, %v573_v54, %v575_v31  ;;  %v586_v32 = vsel %vm578_vm3, %v575_v31, %v577_v29  ;;  %vm1128_vm3 = vsmask.f32 7424 }
 0x1c7   : > { %v2470_v33 = vsel %vm951_vm1, %v960_v57, %v585_v28  ;;  %v2473_v34 = vsel %vm951_vm1, %v961_v3, %v586_v32  ;;  %vm1084_vm1 = vsmask.f32 6400 }
 0x1c8   : > { %vm2572_vm7 = vmand %vm1083_vm0, %vm1084_vm1 }
 0x1c9   : > { %vm2591_vm1 = vmand %vm1127_vm5, %vm1128_vm3  ;;  %vm1139_vm5 = vcmask 130048  }
 0x1ca   : > { %704 = vrot.lane.b32.xlu1 %v1985_v24, %s1715_s27  ;;  %706 = vrot.lane.b32.xlu2 %v1987_v25, %s1715_s27 }
 0x1cb   : > { %671 = vrot.lane.b32.xlu0 %v1989_v26, %s1714_s25 }
 0x1cc   : > { %v592_v36 = vpop.permute.xlu1 %591  ;;  %v2486_v37 = vpop.permute.xlu2 %696 }
 0x1cd   : > { %v590_v16 = vpop.permute.xlu0 %589 }
 0x1ce   : > { %v2489_v19 = vsel %vm607_vm8, %v588_v62, %v590_v16  ;;  %v609_v38 = vsel %vm607_vm8, %v590_v16, %v592_v36 }
 0x1cf   : > { %v998_v39 = vsel %vm2482_vm9, %v2417_v1, %v2489_v19  ;;  %v999_v40 = vsel %vm2482_vm9, %v2438_v10, %v609_v38 }
 0x1d2   : > { %733 = vrot.lane.b32.xlu1 %v1985_v24, %s1716_s11  ;;  %735 = vrot.lane.b32.xlu2 %v1987_v25, %s1716_s11 }
 0x1d3   : > { %708 = vrot.lane.b32.xlu0 %v1989_v26, %s1715_s27 }
 0x1d4   : > { %v629_v41 = vpop.permute.xlu1 %628  ;;  %v2505_v42 = vpop.permute.xlu2 %725 }
 0x1d5   : > { %v596_v43 = vpop.permute.xlu0 %595  ;;  %v647_v56 = vsel %vm644_vm10, %v629_v41, %v2449_v12 }
 0x1da   : > { %770 = vrot.lane.b32.xlu1 %v1985_v24, %s1717_s2  ;;  %772 = vrot.lane.b32.xlu2 %v1987_v25, %s1717_s2 }
 0x1db   : > { %737 = vrot.lane.b32.xlu0 %v1989_v26, %s1716_s11 }
 0x1dc   : > { %v2513_v44 = vpop.permute.xlu1 %657  ;;  %v2515_v15 = vpop.permute.xlu2 %762 }
 0x1dd   : > { %v633_v45 = vpop.permute.xlu0 %632  ;;  %v676_v50 = vsel %vm673_vm11, %v2513_v44, %v2465_v30 }
 0x1de   : > { %v648_v13 = vsel %vm644_vm10, %v2449_v12, %v633_v45 }
 0x1e2   : > { %597 = vrot.lane.b32.xlu1 %v1978_v22, %s1712_s17  ;;  %599 = vrot.lane.b32.xlu2 %v1980_v23, %s1712_s17  ;;  %s1622_s17 = scalar_lea.hbm %s2840_s3, 128 }
 0x1e3   : > { %774 = vrot.lane.b32.xlu0 %v1989_v26, %s1717_s2  ;;  %p1624_p1 = scmp.lt.s32.totalorder %s1622_s17, %s1618_s12 }
 0x1e4   : > { %v2523_v46 = vpop.permute.xlu1 %694  ;;  %v2525_v47 = vpop.permute.xlu2 %791 }
 0x1e5   : > { %v662_v48 = vpop.permute.xlu0 %661  ;;  %v713_v59 = vsel %vm710_vm14, %v2523_v46, %v2486_v37  ;;  %p1625_p2 = por %p1624_p1, %p1623_p4 }
 0x1e6   : > { %v677_v14 = vsel %vm673_vm11, %v2465_v30, %v662_v48 }
 0x1e7   : > { %p1626_p6 = pnand %p1625_p2, %p1621_p13 }
 0x1ea   : > { %801 = vrot.lane.b32.xlu1 %v1987_v25, %s1718_s21  ;;  %803 = vrot.lane.b32.xlu2 %v1989_v26, %s1718_s21  ;;  %v610_v26 = vsel %vm607_vm8, %v592_v36, %v2429_v4 }
 0x1eb   : > { %799 = vrot.lane.b32.xlu0 %v1985_v24, %s1718_s21  ;;  %v1000_v58 = vsel %vm2482_vm9, %v2441_v11, %v610_v26  ;;  %v611_v11 = vsel %vm607_vm8, %v2429_v4, %v596_v43 }
 0x1ec   : > { %v2533_v49 = vpop.permute.xlu1 %723  ;;  %v2535_v51 = vpop.permute.xlu2 %626  ;;  %v1017_v60 = vsel %vm995_vm6, %v1000_v58, %v647_v56  ;;  %v1001_v21 = vsel %vm2482_vm9, %v2433_v7, %v611_v11 }
 0x1ed   : > { %v699_v52 = vpop.permute.xlu0 %698  ;;  %v646_v53 = vsel %vm644_vm10, %v2535_v51, %v629_v41  ;;  %v742_v62 = vsel %vm739_vm15, %v2533_v49, %v2505_v42  ;;  %v1044_v63 = vsel %vm2557_vm2, %v1017_v60, %v676_v50  ;;  %v1021_v31 = vsel %vm995_vm6, %v1001_v21, %v648_v13 }
 0x1ee   : > { %v2540_v54 = vsel %vm995_vm6, %v999_v40, %v646_v53  ;;  %v1061_v2 = vsel %vm1039_vm12, %v1044_v63, %v713_v59  ;;  %v714_v29 = vsel %vm710_vm14, %v2486_v37, %v699_v52  ;;  %v1045_v12 = vsel %vm2557_vm2, %v1021_v31, %v677_v14 }
 0x1ef   : > { %v1088_v17 = vsel %vm2572_vm7, %v1061_v2, %v742_v62  ;;  %v1065_v30 = vsel %vm1039_vm12, %v1045_v12, %v714_v29 }
 0x1f2   : > { %636 = vrot.lane.b32.xlu1 %v1980_v23, %s1713_s30  ;;  %663 = vrot.lane.b32.xlu2 %v1978_v22, %s1714_s25 }
 0x1f3   : > { %634 = vrot.lane.b32.xlu0 %v1978_v22, %s1713_s30 }
 0x1f4   : > { %v2548_v24 = vpop.permute.xlu1 %760  ;;  %v2550_v25 = vpop.permute.xlu2 %690 }
 0x1f5   : > { %v728_v55 = vpop.permute.xlu0 %727  ;;  %v779_v0 = vsel %vm776_vm4, %v2548_v24, %v2515_v15 }
 0x1f6   : > { %v1105_v10 = vsel %vm1083_vm0, %v1088_v17, %v779_v0  ;;  %v743_v4 = vsel %vm739_vm15, %v2505_v42, %v728_v55 }
 0x1f7   : > { %v1089_v36 = vsel %vm2572_vm7, %v1065_v30, %v743_v4 }
 0x1fa   : > { %700 = vrot.lane.b32.xlu1 %v1978_v22, %s1715_s27  ;;  %702 = vrot.lane.b32.xlu2 %v1980_v23, %s1715_s27 }
 0x1fb   : > { %665 = vrot.lane.b32.xlu0 %v1980_v23, %s1714_s25 }
 0x1fc   : > { %v790_v5 = vpop.permute.xlu1 %789  ;;  %v722_v6 = vpop.permute.xlu2 %721 }
 0x1fd   : > { %v808_v8 = vsel %vm805_vm13, %v790_v5, %v2525_v47  ;;  %v765_v9 = vpop.permute.xlu0 %764  ;;  %v741_v60 = vsel %vm739_vm15, %v722_v6, %v2533_v49 }
 0x1fe   : > { %v1132_v20 = vsel %vm2591_vm1, %v1105_v10, %v808_v8  ;;  %v780_v7 = vsel %vm776_vm4, %v2515_v15, %v765_v9 }
 0x1ff   : > { %1176 = vmatpush.bf16.msra.mxu2 %v1132_v20  ;;  %v1109_v38 = vsel %vm1083_vm0, %v1089_v36, %v780_v7  ;;  %v2693_v7 = vld [vmem:[#allocation7] sm:$0xf] }
 0x202   : > { %731 = vrot.lane.b32.xlu1 %v1980_v23, %s1716_s11  ;;  %766 = vrot.lane.b32.xlu2 %v1978_v22, %s1717_s2 }
 0x203   : > { %729 = vrot.lane.b32.xlu0 %v1978_v22, %s1716_s11  ;;  %1392 = vmatmul.msk.bf16.vlgmr.msra.gmra.mxu2 %vm1139_vm5, %v2693_v7 }
 0x204   : > { %v625_v28 = vpop.permute.xlu1 %624  ;;  %v786_v32 = vpop.permute.xlu2 %785 }
 0x205   : > { %v794_v37 = vpop.permute.xlu0 %793 }
 0x206   : > { %v809_v16 = vsel %vm805_vm13, %v2525_v47, %v794_v37 }
 0x207   : > { %v1133_v40 = vsel %vm2591_vm1, %v1109_v38, %v809_v16 }
 0x208   : > { %1189 = vmatpush.bf16.msra.mxu3 %v1133_v40 }
 0x20a   : > { %797 = vrot.lane.b32.xlu2 %v1980_v23, %s1718_s21  ;;  %795 = vrot.lane.b32.xlu1 %v1978_v22, %s1718_s21  ;;  %v645_v22 = vsel %vm644_vm10, %v625_v28, %v2535_v51 }
 0x20b   : > { %768 = vrot.lane.b32.xlu0 %v1980_v23, %s1717_s2  ;;  %1393 = vmatmul.msk.bf16.vlgmr.msra.gmra.mxu3 %vm1139_vm5, %v2693_v7 }
 0x20c   : > { %v656_v41 = vpop.permute.xlu1 %655  ;;  %v604_v42 = vpop.permute.xlu2 %603 }
 0x20d   : > { %v675_v43 = vsel %vm673_vm11, %v656_v41, %v2513_v44  ;;  %v654_v15 = vpop.permute.xlu0 %653 }
 0x20e   : > { %v1043_v45 = vsel %vm2557_vm2, %v2540_v54, %v675_v43  ;;  %v674_v23 = vsel %vm673_vm11, %v654_v15, %v656_v41  ;;  %v1009_v54 = vsel %vm995_vm6, %v998_v39, %v645_v22 }
 0x20f   : > { %v1042_v50 = vsel %vm2557_vm2, %v1009_v54, %v674_v23 }
 0x214   : > { %v720_v47 = vpop.permute.xlu1 %719  ;;  %v641_v48 = vpop.permute.xlu2 %640 }
 0x215   : > { %v693_v52 = vpop.permute.xlu0 %692  ;;  %v740_v51 = vsel %vm739_vm15, %v720_v47, %v722_v6 }
 0x216   : > { %v711_v56 = vsel %vm710_vm14, %v2550_v25, %v693_v52  ;;  %v712_v44 = vsel %vm710_vm14, %v693_v52, %v2523_v46 }
 0x217   : > { %v1053_v58 = vsel %vm1039_vm12, %v1042_v50, %v711_v56  ;;  %v1057_v59 = vsel %vm1039_vm12, %v1043_v45, %v712_v44 }
 0x218   : > { %v1086_v62 = vsel %vm2572_vm7, %v1053_v58, %v740_v51  ;;  %v1087_v63 = vsel %vm2572_vm7, %v1057_v59, %v741_v60 }
 0x21c   : > { %v759_v53 = vpop.permute.xlu1 %758  ;;  %v670_v26 = vpop.permute.xlu2 %669 }
 0x21d   : > { %v757_v55 = vpop.permute.xlu0 %756  ;;  %v778_v25 = vsel %vm776_vm4, %v759_v53, %v2548_v24 }
 0x21e   : > { %v777_v46 = vsel %vm776_vm4, %v757_v55, %v759_v53  ;;  %v1101_v17 = vsel %vm1083_vm0, %v1087_v63, %v778_v25 }
 0x21f   : > { %v1097_v24 = vsel %vm1083_vm0, %v1086_v62, %v777_v46 }
 0x224   : > { %v602_v1 = vpop.permute.xlu1 %601  ;;  %v707_v19 = vpop.permute.xlu2 %706 }
 0x225   : > { %v788_v39 = vpop.permute.xlu0 %787  ;;  %v614_v16 = vsel %vm607_vm8, %v602_v1, %v604_v42 }
 0x226   : > { %v806_v0 = vsel %vm805_vm13, %v786_v32, %v788_v39  ;;  %v807_v2 = vsel %vm805_vm13, %v788_v39, %v790_v5  ;;  %v1004_v47 = vsel %vm2482_vm9, %v2470_v33, %v614_v16 }
 0x227   : > { %v1130_v49 = vsel %vm2591_vm1, %v1097_v24, %v806_v0  ;;  %v1131_v6 = vsel %vm2591_vm1, %v1101_v17, %v807_v2 }
 0x228   : > { %1150 = vmatpush.bf16.msra.mxu0 %v1130_v49  ;;  %1163 = vmatpush.bf16.msra.mxu1 %v1131_v6 }
 0x22b   : > { %1390 = vmatmul.msk.bf16.vlgmr.msra.gmra.mxu0 %vm1139_vm5, %v2693_v7  ;;  %1391 = vmatmul.msk.bf16.vlgmr.msra.gmra.mxu1 %vm1139_vm5, %v2693_v7 }
 0x22c   : > { %v639_v8 = vpop.permute.xlu1 %638  ;;  %v736_v9 = vpop.permute.xlu2 %735 }
 0x22d   : > { %v606_v10 = vpop.permute.xlu0 %605  ;;  %v651_v40 = vsel %vm644_vm10, %v639_v8, %v641_v48 }
 0x22e   : > { %v615_v36 = vsel %vm607_vm8, %v604_v42, %v606_v10  ;;  %v1033_v53 = vsel %vm995_vm6, %v1004_v47, %v651_v40 }
 0x22f   : > { %v1005_v43 = vsel %vm2482_vm9, %v2473_v34, %v615_v36 }
 0x234   : > { %v2680_v11 = vpop.permute.xlu1 %667  ;;  %v773_v20 = vpop.permute.xlu2 %772 }
 0x235   : > { %v643_v13 = vpop.permute.xlu0 %642  ;;  %v680_v15 = vsel %vm673_vm11, %v2680_v11, %v670_v26 }
 0x236   : > { %v652_v38 = vsel %vm644_vm10, %v641_v48, %v643_v13  ;;  %v1048_v33 = vsel %vm2557_vm2, %v1033_v53, %v680_v15 }
 0x237   : > { %v1037_v42 = vsel %vm995_vm6, %v1005_v43, %v652_v38 }
 0x23c   : > { %v2682_v5 = vpop.permute.xlu1 %704  ;;  %v2684_v14 = vpop.permute.xlu2 %599 }
 0x23d   : > { %v672_v21 = vpop.permute.xlu0 %671  ;;  %v613_v29 = vsel %vm607_vm8, %v2684_v14, %v602_v1  ;;  %v717_v48 = vsel %vm710_vm14, %v2682_v5, %v707_v19 }
 0x23e   : > { %v1003_v31 = vsel %vm2482_vm9, %v2453_v18, %v613_v29  ;;  %v681_v41 = vsel %vm673_vm11, %v670_v26, %v672_v21  ;;  %v1077_v56 = vsel %vm1039_vm12, %v1048_v33, %v717_v48 }
 0x23f   : > { %v1049_v34 = vsel %vm2557_vm2, %v1037_v42, %v681_v41 }
 0x244   : > { %v2691_v4 = vpop.permute.xlu1 %733  ;;  %v804_v28 = vpop.permute.xlu2 %803 }
 0x245   : > { %v709_v12 = vpop.permute.xlu0 %708  ;;  %v746_v26 = vsel %vm739_vm15, %v2691_v4, %v736_v9 }
 0x246   : > { %v718_v45 = vsel %vm710_vm14, %v707_v19, %v709_v12  ;;  %v1092_v50 = vsel %vm2572_vm7, %v1077_v56, %v746_v26 }
 0x247   : > { %v1081_v55 = vsel %vm1039_vm12, %v1049_v34, %v718_v45 }
 0x24c   : > { %v2703_v30 = vpop.permute.xlu1 %770  ;;  %v664_v25 = vpop.permute.xlu2 %663 }
 0x24d   : > { %v738_v18 = vpop.permute.xlu0 %737  ;;  %v783_v23 = vsel %vm776_vm4, %v2703_v30, %v773_v20 }
 0x24e   : > { %v747_v52 = vsel %vm739_vm15, %v736_v9, %v738_v18  ;;  %v1121_v60 = vsel %vm1083_vm0, %v1092_v50, %v783_v23 }
 0x24f   : > { %v1093_v44 = vsel %vm2572_vm7, %v1081_v55, %v747_v52 }
 0x254   : > { %v598_v32 = vpop.permute.xlu1 %597  ;;  %v703_v2 = vpop.permute.xlu2 %702 }
 0x255   : > { %v775_v37 = vpop.permute.xlu0 %774 }
 0x256   : > { %v784_v22 = vsel %vm776_vm4, %v773_v20, %v775_v37  ;;  %v612_v20 = vsel %vm607_vm8, %v598_v32, %v2684_v14 }
 0x257   : > { %v1125_v59 = vsel %vm1083_vm0, %v1093_v44, %v784_v22  ;;  %v1002_v29 = vsel %vm2482_vm9, %v2457_v27, %v612_v20 }
 0x25c   : > { %v802_v54 = vpop.permute.xlu1 %801  ;;  %v767_v9 = vpop.permute.xlu2 %766 }
 0x25d   : > { %v813_v51 = vsel %vm805_vm13, %v802_v54, %v804_v28  ;;  %v800_v58 = vpop.permute.xlu0 %799  ;;  %v716_v28 = vsel %vm710_vm14, %v703_v2, %v2682_v5 }
 0x25e   : > { %v812_v46 = vsel %vm805_vm13, %v800_v58, %v802_v54  ;;  %v1137_v1 = vsel %vm2591_vm1, %v1125_v59, %v813_v51 }
 0x25f   : > { %v1136_v19 = vsel %vm2591_vm1, %v1121_v60, %v812_v46  ;;  %1241 = vmatpush.bf16.msrb.mxu3 %v1137_v1 }
 0x260   : > { %1228 = vmatpush.bf16.msrb.mxu2 %v1136_v19 }
 0x262   : > { %1397 = vmatmul.msk.bf16.vlgmr.msrb.gmra.mxu3 %vm1139_vm5, %v2693_v7 }
 0x263   : > { %1396 = vmatmul.msk.bf16.vlgmr.msrb.gmra.mxu2 %vm1139_vm5, %v2693_v7 }
 0x264   : > { %v637_v39 = vpop.permute.xlu1 %636  ;;  %v798_v32 = vpop.permute.xlu2 %797 }
 0x265   : > { %v650_v62 = vsel %vm644_vm10, %v637_v39, %v639_v8  ;;  %v635_v63 = vpop.permute.xlu0 %634  ;;  %v811_v40 = vsel %vm805_vm13, %v798_v32, %v800_v58 }
 0x266   : > { %v1029_v0 = vsel %vm995_vm6, %v1003_v31, %v650_v62  ;;  %v649_v8 = vsel %vm644_vm10, %v635_v63, %v637_v39 }
 0x267   : > { %v1025_v31 = vsel %vm995_vm6, %v1002_v29, %v649_v8 }
 0x26c   : > { %v701_v24 = vpop.permute.xlu1 %700 }
 0x26d   : > { %v666_v17 = vpop.permute.xlu0 %665 }
 0x26e   : > { %v679_v49 = vsel %vm673_vm11, %v666_v17, %v2680_v11  ;;  %v678_v21 = vsel %vm673_vm11, %v664_v25, %v666_v17  ;;  %v715_v11 = vsel %vm710_vm14, %v701_v24, %v703_v2 }
 0x26f   : > { %v1047_v6 = vsel %vm2557_vm2, %v1029_v0, %v679_v49  ;;  %v1046_v12 = vsel %vm2557_vm2, %v1025_v31, %v678_v21 }
 0x270   : > { %v1073_v35 = vsel %vm1039_vm12, %v1047_v6, %v716_v28  ;;  %v1069_v27 = vsel %vm1039_vm12, %v1046_v12, %v715_v11 }
 0x274   : > { %v732_v10 = vpop.permute.xlu1 %731 }
 0x275   : > { %v730_v13 = vpop.permute.xlu0 %729  ;;  %v745_v18 = vsel %vm739_vm15, %v732_v10, %v2691_v4 }
 0x276   : > { %v744_v14 = vsel %vm739_vm15, %v730_v13, %v732_v10  ;;  %v1091_v57 = vsel %vm2572_vm7, %v1073_v35, %v745_v18 }
 0x277   : > { %v1090_v4 = vsel %vm2572_vm7, %v1069_v27, %v744_v14 }
 0x27c   : > { %v796_v36 = vpop.permute.xlu1 %795 }
 0x27d   : > { %v769_v37 = vpop.permute.xlu0 %768  ;;  %v810_v16 = vsel %vm805_vm13, %v796_v36, %v798_v32 }
 0x27e   : > { %v781_v38 = vsel %vm776_vm4, %v767_v9, %v769_v37  ;;  %v782_v5 = vsel %vm776_vm4, %v769_v37, %v2703_v30 }
 0x27f   : > { %v1113_v41 = vsel %vm1083_vm0, %v1090_v4, %v781_v38  ;;  %v1117_v43 = vsel %vm1083_vm0, %v1091_v57, %v782_v5 }
 0x280   : > { %v1134_v15 = vsel %vm2591_vm1, %v1113_v41, %v810_v16  ;;  %v1135_v45 = vsel %vm2591_vm1, %v1117_v43, %v811_v40 }
 0x281   : > { %1202 = vmatpush.bf16.msrb.mxu0 %v1134_v15  ;;  %1215 = vmatpush.bf16.msrb.mxu1 %v1135_v45 }
 0x284   : > { %1394 = vmatmul.msk.bf16.vlgmr.msrb.gmra.mxu0 %vm1139_vm5, %v2693_v7  ;;  %1395 = vmatmul.msk.bf16.vlgmr.msrb.gmra.mxu1 %vm1139_vm5, %v2693_v7 }
 0x286   : > { %v1178_v47 = vpop.f32.mrf.mxu2 }
 0x287   : > { %1249 = vst [vmem:[%s247_s10 + $0x10] sm:$0xff] %v1178_v47 }
 0x28e   : > { %v1191_v42 = vpop.f32.mrf.mxu3  ;;  %v1180_v52 = vpop.f32.mrf.mxu2 }
 0x28f   : > { %1250 = vst [vmem:[%s247_s10 + $0x18] sm:$0xff] %v1191_v42 }
 0x296   : > { %v1193_v53 = vpop.f32.mrf.mxu3 }
 0x2a8   : > { %v1152_v61 = vpop.f32.mrf.mxu0  ;;  %v1165_v30 = vpop.f32.mrf.mxu1 }
 0x2a9   : > { %1247 = vst [vmem:[%s247_s10] sm:$0xff] %v1152_v61 }
 0x2aa   : > { %1248 = vst [vmem:[%s247_s10 + $0x8] sm:$0xff] %v1165_v30 }
 0x2b0   : > { %v1154_v3 = vpop.f32.mrf.mxu0  ;;  %v1167_v48 = vpop.f32.mrf.mxu1 }
 0x2e5   : > { %v1243_v34 = vpop.f32.mrf.mxu3 }
 0x2e6   : > { %v1230_v26 = vpop.f32.mrf.mxu2  ;;  %1254 = vst [vmem:[%s247_s10 + $0x38] sm:$0xff] %v1243_v34 }
 0x2e7   : > { %1253 = vst [vmem:[%s247_s10 + $0x30] sm:$0xff] %v1230_v26 }
 0x2ed   : > { %v1245_v7 = vpop.f32.mrf.mxu3 }
 0x2ee   : > { %v1232_v22 = vpop.f32.mrf.mxu2 }
 0x301   : > { %v1204_v33 = vpop.f32.mrf.mxu0  ;;  %v1217_v55 = vpop.f32.mrf.mxu1 }
 0x302   : > { %1251 = vst [vmem:[%s247_s10 + $0x20] sm:$0xff] %v1204_v33 }
 0x303   : > { %1252 = vst [vmem:[%s247_s10 + $0x28] sm:$0xff] %v1217_v55 }
 0x304   : > { %1629 = shalt.err (!%p1626_p6)
}
 0x305   : > { %s1719_s4 = smov 512   ;;  %s1720_s27 = smov 1024  }
 0x306   : > { %s1721_s11 = smov 32  }
 0x307   : > { %1417 = dma.vmem_to_hbm [thread:$0]  (%p2887_p10), %s1269_s23, 1024, %s1271_s20, %s1256_s29, %s1719_s4, %s1720_s27, %s1721_s11  }
 0x309   : > { %v1206_v23 = vpop.f32.mrf.mxu0  ;;  %v1219_v56 = vpop.f32.mrf.mxu1 }
 0x30a PF: > { %s1285_s2 = sand.u32 1, %s1688_s15   ;;  %p2888_p5 = scmp.ne.s32.totalorder %s2861_s9, 0 }
 0x30b   : > { %p2889_p7 = scmp.ge.s32.totalorder %s1700_s18, 2  ;;  %s1286_s21 = scalar_lea.sflag [#allocation4], %s1285_s2 }
 0x30d   : > { %p1424_p0 = pnand %p2889_p7, %p2888_p5 }
 0x30f   : > { %p1425_p3 = pneg %p1424_p0 }
 0x311   : > { %1671 = dma.done.wait (%p1425_p3), %s1286_s21, 1024  }
 0x312   : > { %1673 = vsyncadd (%p1425_p3), %s1286_s21, 4294966272  ;;  %s2890_s18 = sld [smem:[#allocation14_spill]]  ;;  %s2894_s12 = smov %s1680_s13 }
 0x313   : > { %s2891_s5 = sld [smem:[#allocation16_spill]]  ;;  %s2895_s13 = smov %s1684_s14 }
 0x314   : > { %s2892_s8 = sld [smem:[#allocation13_spill]]  ;;  %s2897_s15 = smov %s1692_s16 }
 0x315   : > { %s2893_s17 = sld [smem:[#allocation15_spill]] }
 0x318   : > { %p19_p9 = scmp.ge.s32.totalorder %s2890_s18, 4  }
 0x319   : > { %s2896_s14 = smov %s2891_s5 }
 0x31a   : > { %s2898_s16 = smov %s2892_s8  ;;  %21 = sbr.rel (!%p19_p9) target bundleno = 11 (0xb), region = 94 }
 0x31f   :  { %1292 = vsyncpa [#allocation3], 1 }
 0x320   :  { %1294 = vsyncpa [#allocation3 + $0x1], 1 }
 0x321   :  { %1295 = vsyncpa [#allocation6], 1 }
 0x322   :  { %1297 = vsyncpa [#allocation6 + $0x1], 1 }
 0x323   :  { %1298 = vsyncpa [#allocation4], 1 }
 0x324   :  { %1300 = vsyncpa [#allocation4 + $0x1], 1 }

</bundles_post_ra>
